<compile_context>
chip_gen: v5e
topology: v5e:2x2
jax: 0.10.0
libtpu: 0.0.40
codegen_flags: <defaults>
</compile_context>

<pallas_src>
import jax
import jax.numpy as jnp
import numpy as np
from jax import lax
from jax.experimental import pallas as pl
from jax.experimental.pallas import tpu as pltpu


# ----------------------------------------------------------------------------
# Fused Pallas kernel: conv1 (ELU) -> conv2 (ELU) -> conv3 -> log_softmax
# ----------------------------------------------------------------------------
def _gat3_kernel(x_ref, adj_s_ref, adj_m_ref,
                 w1_ref, tsrc1_ref, tdst1_ref, b1_ref,
                 w2_ref, tsrc2_ref, tdst2_ref, b2_ref,
                 w3_ref, asrc3_ref, adst3_ref, b3_ref, fmask_ref,
                 teye_ln_ref, teye_sb_ref, hmask_ref,
                 out_ref):
    neg_big = jnp.float32(-1e30)
    slope = jnp.float32(0.2)

    x = x_ref[...]                        # (N, F_in)
    edge_s = adj_s_ref[...] != 0          # (N, N)     bool, layer-3 mask
    edge_m = adj_m_ref[...] != 0          # (N, H*N)   bool, layers 1-2 mask (hoisted)
    teye_ln = teye_ln_ref[...]            # (N, H*N)   tiled identity (lane-replicated)
    teye_sb = teye_sb_ref[...]            # (H*N, N)   tiled identity (sublane-replicated)
    hmask = hmask_ref[...]                # (H*N, H*F) block-diagonal head mask

    def mh_layer(h_in, w_ref, tsrc_ref, tdst_ref, b_ref):
        # Linear transform (PyG GATConv.lin has no bias)
        xw = jnp.dot(h_in, w_ref[...], preferred_element_type=jnp.float32)       # (N, H*F)
        # dst_b[i, h*N+j] = <xw[i, h-block], att_dst[h]>  (att folded into tdst)
        dst_b = jnp.dot(xw, tdst_ref[...], preferred_element_type=jnp.float32)   # (N, H*N)
        # ysrc[j', h*N+j] = <xw[j', h-block], att_src[h]>; pick j'==j via teye_ln
        ysrc = jnp.dot(xw, tsrc_ref[...], preferred_element_type=jnp.float32)    # (N, H*N)
        src_row = jnp.sum(ysrc * teye_ln, axis=0, keepdims=True)                 # (1, H*N)
        # e[i, h*N+j] = leaky_relu(a_dst[i,h] + a_src[j,h]), masked to edges j->i
        e = dst_b + src_row
        e = jnp.where(e > 0, e, slope * e)                                       # LeakyReLU(0.2)
        e = jnp.where(edge_m, e, neg_big)
        # Full-width softmax over incoming neighbours (per head segment).
        # Global row max is a constant per (row, head) -> per-head softmax exact.
        m = jnp.max(e, axis=-1, keepdims=True)
        p = jnp.exp(e - m)                                   # masked entries -> exactly 0
        # Block-diagonal aggregation: all heads with a single MXU matmul.
        xst = jnp.dot(teye_sb, xw, preferred_element_type=jnp.float32) * hmask   # (H*N, H*F)
        agg = jnp.dot(p, xst, preferred_element_type=jnp.float32)                # (N, H*F)
        den = jnp.dot(p, hmask, preferred_element_type=jnp.float32)              # per-head sums
        out = agg / den + b_ref[...]
        # ELU (alpha = 1)
        return jnp.where(out > 0, out, jnp.exp(jnp.minimum(out, 0.0)) - 1.0)

    h1 = mh_layer(x, w1_ref, tsrc1_ref, tdst1_ref, b1_ref)
    h2 = mh_layer(h1, w2_ref, tsrc2_ref, tdst2_ref, b2_ref)

    # ---- layer 3: single head, feature dim padded to a lane-dense width ----
    xw3 = jnp.dot(h2, w3_ref[...], preferred_element_type=jnp.float32)           # (N, OP)
    a_dst3 = jnp.dot(xw3, adst3_ref[...], preferred_element_type=jnp.float32)    # (N, 1)
    a_src3 = lax.dot_general(asrc3_ref[...], xw3, (((1,), (1,)), ((), ())),
                             preferred_element_type=jnp.float32)                 # (1, N)
    e3 = a_dst3 + a_src3
    e3 = jnp.where(e3 > 0, e3, slope * e3)
    e3 = jnp.where(edge_s, e3, neg_big)
    m3 = jnp.max(e3, axis=-1, keepdims=True)
    p3 = jnp.exp(e3 - m3)
    s3 = jnp.sum(p3, axis=-1, keepdims=True)
    agg3 = jnp.dot(p3, xw3, preferred_element_type=jnp.float32)                  # (N, OP)
    out3 = agg3 / s3 + b3_ref[...] + fmask_ref[...]    # fmask = -1e30 on pad lanes
    # log_softmax over the (padded) class dim; pad lanes contribute exp(-huge)=0
    mm = jnp.max(out3, axis=-1, keepdims=True)
    sh = out3 - mm
    out_ref[...] = sh - jnp.log(jnp.sum(jnp.exp(sh), axis=-1, keepdims=True))


# ----------------------------------------------------------------------------
# Wrapper: fold attention vectors / head layout into constant matrices,
# pad the output width to 128 lanes, launch ONE pallas_call.
# ----------------------------------------------------------------------------
def _att_broadcast(att, f_out, heads, n):
    """T[h*f_out + f, h*n + j] = att[h, f]  (zero off the head block)."""
    t = np.zeros((heads * f_out, heads * n), np.float32)
    att = np.asarray(att, np.float32)
    for h in range(heads):
        t[h * f_out:(h + 1) * f_out, h * n:(h + 1) * n] = att[h][:, None]
    return t


def _build_gat_inputs(params, adj, n, heads, hidden_dim, output_dim, out_pad):
    d_hid = heads * hidden_dim

    w1, s1, t1, b1 = [np.asarray(a, np.float32) for a in params["l1"]]
    w2, s2, t2, b2 = [np.asarray(a, np.float32) for a in params["l2"]]
    w3, s3, t3, b3 = [np.asarray(a, np.float32) for a in params["l3"]]

    tsrc1 = _att_broadcast(s1, hidden_dim, heads, n)
    tdst1 = _att_broadcast(t1, hidden_dim, heads, n)
    tsrc2 = _att_broadcast(s2, hidden_dim, heads, n)
    tdst2 = _att_broadcast(t2, hidden_dim, heads, n)

    # Layer 3 (heads=1): pad the class dim to out_pad for a lane-dense store.
    w3p = np.zeros((w3.shape[0], out_pad), np.float32)
    w3p[:, :output_dim] = w3
    asrc3 = np.zeros((1, out_pad), np.float32)
    asrc3[0, :output_dim] = s3[0]
    adst3 = np.zeros((out_pad, 1), np.float32)
    adst3[:output_dim, 0] = t3[0]
    b3p = np.zeros((1, out_pad), np.float32)
    b3p[0, :output_dim] = b3[0]
    fmask = np.full((1, out_pad), -1e30, np.float32)
    fmask[0, :output_dim] = 0.0

    # Head-layout constants (shared by layers 1 and 2).
    hmask = np.zeros((heads * n, d_hid), np.float32)
    for h in range(heads):
        hmask[h * n:(h + 1) * n, h * hidden_dim:(h + 1) * hidden_dim] = 1.0
    eye = np.eye(n, dtype=np.float32)
    teye_ln = np.tile(eye, (1, heads))     # (N, H*N)
    teye_sb = np.tile(eye, (heads, 1))     # (H*N, N)

    adj_s = np.asarray(adj, np.int8)       # (N, N)     adjacency, loaded once
    adj_m = np.tile(adj_s, (1, heads))     # (N, H*N)   head-tiled mask

    return [adj_s, adj_m,
            w1, tsrc1, tdst1, b1,
            w2, tsrc2, tdst2, b2,
            w3p, asrc3, adst3, b3p, fmask,
            teye_ln, teye_sb, hmask]


def _vspec(shape):
    return pl.BlockSpec(shape, lambda i: (0, 0))


def gat_forward(x, adj, params, *, hidden_dim, output_dim, heads=8, out_pad=128):
    n, _ = x.shape
    extras = _build_gat_inputs(params, adj, n, heads, hidden_dim, output_dim, out_pad)
    args = [jnp.asarray(x, jnp.float32)] + [jnp.asarray(a) for a in extras]

    out = pl.pallas_call(
        _gat3_kernel,
        out_shape=jax.ShapeDtypeStruct((n, out_pad), jnp.float32),
        grid=(1,),
        in_specs=[_vspec(a.shape) for a in args],
        out_specs=_vspec((n, out_pad)),
        compiler_params=pltpu.CompilerParams(dimension_semantics=("arbitrary",)),
    )(*args)
    return out[:, :output_dim]             # slice the lane padding back off


# ----------------------------------------------------------------------------
# Pure-numpy reference (for correctness check)
# ----------------------------------------------------------------------------
def _ref_layer(x, adj, w, att_src, att_dst, bias, heads, f_out, activation):
    n = x.shape[0]
    xw = (x @ w).reshape(n, heads, f_out)
    a_src = (xw * att_src[None]).sum(-1)   # (N, H)
    a_dst = (xw * att_dst[None]).sum(-1)   # (N, H)
    outs = []
    for h in range(heads):
        e = a_dst[:, h][:, None] + a_src[:, h][None, :]
        e = np.where(e > 0, e, 0.2 * e)
        e = np.where(adj > 0, e, -1e30)
        e = e - e.max(-1, keepdims=True)
        p = np.exp(e) * (adj > 0)
        att = p / p.sum(-1, keepdims=True)
        outs.append(att @ xw[:, h, :])
    out = np.concatenate(outs, -1) + bias
    if activation == "elu":
        out = np.where(out > 0, out, np.exp(np.minimum(out, 0.0)) - 1.0)
    elif activation == "log_softmax":
        s = out - out.max(-1, keepdims=True)
        out = s - np.log(np.exp(s).sum(-1, keepdims=True))
    return out


def _ref_forward(x, adj, params, hidden_dim, output_dim, heads=8):
    p = {k: [np.asarray(a) for a in v] for k, v in params.items()}
    x, adj = np.asarray(x), np.asarray(adj)
    h = _ref_layer(x, adj, *p["l1"], heads, hidden_dim, "elu")
    h = _ref_layer(h, adj, *p["l2"], heads, hidden_dim, "elu")
    return _ref_layer(h, adj, *p["l3"], 1, output_dim, "log_softmax")


# ----------------------------------------------------------------------------
# Deterministic setup + run
# ----------------------------------------------------------------------------
def _make_params(key, input_dim, hidden_dim, output_dim, heads):
    def layer(key, f_in, f_out, h):
        k1, k2, k3, k4 = jax.random.split(key, 4)
        scale = 1.0 / np.sqrt(f_in)
        w = jax.random.normal(k1, (f_in, h * f_out), jnp.float32) * scale
        a_s = jax.random.normal(k2, (h, f_out), jnp.float32) * 0.1
        a_d = jax.random.normal(k3, (h, f_out), jnp.float32) * 0.1
        b = jax.random.normal(k4, (1, h * f_out), jnp.float32) * 0.01
        return (w, a_s, a_d, b)

    k1, k2, k3 = jax.random.split(key, 3)
    return {
        "l1": layer(k1, input_dim, hidden_dim, heads),
        "l2": layer(k2, hidden_dim * heads, hidden_dim, heads),
        "l3": layer(k3, hidden_dim * heads, output_dim, 1),
    }


def _dense_adj(edge_index, n):
    """adj[dst, src] = 1 for every edge src->dst, plus self-loops (PyG default)."""
    adj = np.zeros((n, n), dtype=np.int8)
    src, dst = edge_index
    adj[dst, src] = 1
    np.fill_diagonal(adj, 1)
    return adj


if __name__ == "__main__":
    N, INPUT_DIM, HIDDEN_DIM, OUTPUT_DIM, HEADS = 16, 16, 8, 6, 8

    key = jax.random.PRNGKey(0)
    kx, kp, ke = jax.random.split(key, 3)

    # Node features
    x = jax.random.normal(kx, (N, INPUT_DIM), jnp.float32)

    # Deterministic edge_index (ring + a few extra edges), COO (2, E)
    ring_src = np.arange(N)
    ring_dst = (np.arange(N) + 1) % N
    extra_src = np.asarray(jax.random.randint(ke, (12,), 0, N))
    extra_dst = (extra_src + 5) % N
    edge_index = np.stack([
        np.concatenate([ring_src, ring_dst, extra_src]),
        np.concatenate([ring_dst, ring_src, extra_dst]),
    ])
    adj = _dense_adj(edge_index, N)

    params = _make_params(kp, INPUT_DIM, HIDDEN_DIM, OUTPUT_DIM, HEADS)

    out = gat_forward(x, adj, params, hidden_dim=HIDDEN_DIM,
                      output_dim=OUTPUT_DIM, heads=HEADS)
    out = jax.block_until_ready(out)

    ref = _ref_forward(np.asarray(x), adj, params, HIDDEN_DIM, OUTPUT_DIM, HEADS)
    assert out.shape == (N, OUTPUT_DIM)
    np.testing.assert_allclose(np.asarray(out), ref, rtol=1e-4, atol=1e-4)
    # rows of log_softmax must sum to 1 in prob space
    np.testing.assert_allclose(np.exp(np.asarray(out)).sum(-1), 1.0, atol=1e-4)

    print("KERNEL_OK")
</pallas_src>

<mosaic_0001>
module attributes {stable_mosaic.version = 11 : i64} {
  func.func @_gat3_kernel(%arg0: i32, %arg1: memref<16x16xf32, #tpu.memory_space<vmem>>, %arg2: memref<16x16xi8, #tpu.memory_space<vmem>>, %arg3: memref<16x128xi8, #tpu.memory_space<vmem>>, %arg4: memref<16x64xf32, #tpu.memory_space<vmem>>, %arg5: memref<64x128xf32, #tpu.memory_space<vmem>>, %arg6: memref<64x128xf32, #tpu.memory_space<vmem>>, %arg7: memref<1x64xf32, #tpu.memory_space<vmem>>, %arg8: memref<64x64xf32, #tpu.memory_space<vmem>>, %arg9: memref<64x128xf32, #tpu.memory_space<vmem>>, %arg10: memref<64x128xf32, #tpu.memory_space<vmem>>, %arg11: memref<1x64xf32, #tpu.memory_space<vmem>>, %arg12: memref<64x128xf32, #tpu.memory_space<vmem>>, %arg13: memref<1x128xf32, #tpu.memory_space<vmem>>, %arg14: memref<128x1xf32, #tpu.memory_space<vmem>>, %arg15: memref<1x128xf32, #tpu.memory_space<vmem>>, %arg16: memref<1x128xf32, #tpu.memory_space<vmem>>, %arg17: memref<16x128xf32, #tpu.memory_space<vmem>>, %arg18: memref<128x16xf32, #tpu.memory_space<vmem>>, %arg19: memref<128x64xf32, #tpu.memory_space<vmem>>, %arg20: memref<16x128xf32, #tpu.memory_space<vmem>>) attributes {dimension_semantics = [#tpu.dimension_semantics<arbitrary>], iteration_bounds = array<i64: 1>, scalar_prefetch = 0 : i64, scratch_operands = 0 : i64, tpu.core_type = #tpu.core_type<tc>, window_params = [{pipeline_mode = #tpu.pipeline_mode<synchronous>, transform_indices = @transform_0, window_bounds = array<i64: 16, 16>}, {pipeline_mode = #tpu.pipeline_mode<synchronous>, transform_indices = @transform_1, window_bounds = array<i64: 16, 16>}, {pipeline_mode = #tpu.pipeline_mode<synchronous>, transform_indices = @transform_2, window_bounds = array<i64: 16, 128>}, {pipeline_mode = #tpu.pipeline_mode<synchronous>, transform_indices = @transform_3, window_bounds = array<i64: 16, 64>}, {pipeline_mode = #tpu.pipeline_mode<synchronous>, transform_indices = @transform_4, window_bounds = array<i64: 64, 128>}, {pipeline_mode = #tpu.pipeline_mode<synchronous>, transform_indices = @transform_5, window_bounds = array<i64: 64, 128>}, {pipeline_mode = #tpu.pipeline_mode<synchronous>, transform_indices = @transform_6, window_bounds = array<i64: 1, 64>}, {pipeline_mode = #tpu.pipeline_mode<synchronous>, transform_indices = @transform_7, window_bounds = array<i64: 64, 64>}, {pipeline_mode = #tpu.pipeline_mode<synchronous>, transform_indices = @transform_8, window_bounds = array<i64: 64, 128>}, {pipeline_mode = #tpu.pipeline_mode<synchronous>, transform_indices = @transform_9, window_bounds = array<i64: 64, 128>}, {pipeline_mode = #tpu.pipeline_mode<synchronous>, transform_indices = @transform_10, window_bounds = array<i64: 1, 64>}, {pipeline_mode = #tpu.pipeline_mode<synchronous>, transform_indices = @transform_11, window_bounds = array<i64: 64, 128>}, {pipeline_mode = #tpu.pipeline_mode<synchronous>, transform_indices = @transform_12, window_bounds = array<i64: 1, 128>}, {pipeline_mode = #tpu.pipeline_mode<synchronous>, transform_indices = @transform_13, window_bounds = array<i64: 128, 1>}, {pipeline_mode = #tpu.pipeline_mode<synchronous>, transform_indices = @transform_14, window_bounds = array<i64: 1, 128>}, {pipeline_mode = #tpu.pipeline_mode<synchronous>, transform_indices = @transform_15, window_bounds = array<i64: 1, 128>}, {pipeline_mode = #tpu.pipeline_mode<synchronous>, transform_indices = @transform_16, window_bounds = array<i64: 16, 128>}, {pipeline_mode = #tpu.pipeline_mode<synchronous>, transform_indices = @transform_17, window_bounds = array<i64: 128, 16>}, {pipeline_mode = #tpu.pipeline_mode<synchronous>, transform_indices = @transform_18, window_bounds = array<i64: 128, 64>}, {pipeline_mode = #tpu.pipeline_mode<synchronous>, transform_indices = @transform_19, window_bounds = array<i64: 16, 128>}]} {
    %c0 = arith.constant 0 : index
    %c0_0 = arith.constant 0 : index
    %0 = vector.load %arg1[%c0, %c0_0] : memref<16x16xf32, #tpu.memory_space<vmem>>, vector<16x16xf32>
    %c0_1 = arith.constant 0 : index
    %c0_2 = arith.constant 0 : index
    %1 = vector.load %arg2[%c0_1, %c0_2] : memref<16x16xi8, #tpu.memory_space<vmem>>, vector<16x16xi8>
    %c0_i8 = arith.constant 0 : i8
    %2 = vector.broadcast %c0_i8 : i8 to vector<16x16xi8>
    %3 = arith.cmpi ne, %1, %2 : vector<16x16xi8>
    %c0_3 = arith.constant 0 : index
    %c0_4 = arith.constant 0 : index
    %4 = vector.load %arg3[%c0_3, %c0_4] : memref<16x128xi8, #tpu.memory_space<vmem>>, vector<16x128xi8>
    %c0_i8_5 = arith.constant 0 : i8
    %5 = vector.broadcast %c0_i8_5 : i8 to vector<16x128xi8>
    %6 = arith.cmpi ne, %4, %5 : vector<16x128xi8>
    %c0_6 = arith.constant 0 : index
    %c0_7 = arith.constant 0 : index
    %7 = vector.load %arg17[%c0_6, %c0_7] : memref<16x128xf32, #tpu.memory_space<vmem>>, vector<16x128xf32>
    %c0_8 = arith.constant 0 : index
    %c0_9 = arith.constant 0 : index
    %8 = vector.load %arg18[%c0_8, %c0_9] : memref<128x16xf32, #tpu.memory_space<vmem>>, vector<128x16xf32>
    %c0_10 = arith.constant 0 : index
    %c0_11 = arith.constant 0 : index
    %9 = vector.load %arg19[%c0_10, %c0_11] : memref<128x64xf32, #tpu.memory_space<vmem>>, vector<128x64xf32>
    %c0_12 = arith.constant 0 : index
    %c0_13 = arith.constant 0 : index
    %10 = vector.load %arg4[%c0_12, %c0_13] : memref<16x64xf32, #tpu.memory_space<vmem>>, vector<16x64xf32>
    %cst = arith.constant dense<0.000000e+00> : vector<16x64xf32>
    %11 = tpu.matmul %0, %10, %cst {dimension_numbers = #tpu.dot_dimension_numbers<[1], [0], [0], [1], [0, 0, 1, 1], [], []>} : vector<16x16xf32>, vector<16x64xf32>, vector<16x64xf32> -> vector<16x64xf32>
    %c0_14 = arith.constant 0 : index
    %c0_15 = arith.constant 0 : index
    %12 = vector.load %arg6[%c0_14, %c0_15] : memref<64x128xf32, #tpu.memory_space<vmem>>, vector<64x128xf32>
    %cst_16 = arith.constant dense<0.000000e+00> : vector<16x128xf32>
    %13 = tpu.matmul %11, %12, %cst_16 {dimension_numbers = #tpu.dot_dimension_numbers<[1], [0], [0], [1], [0, 0, 1, 1], [], []>} : vector<16x64xf32>, vector<64x128xf32>, vector<16x128xf32> -> vector<16x128xf32>
    %c0_17 = arith.constant 0 : index
    %c0_18 = arith.constant 0 : index
    %14 = vector.load %arg5[%c0_17, %c0_18] : memref<64x128xf32, #tpu.memory_space<vmem>>, vector<64x128xf32>
    %cst_19 = arith.constant dense<0.000000e+00> : vector<16x128xf32>
    %15 = tpu.matmul %11, %14, %cst_19 {dimension_numbers = #tpu.dot_dimension_numbers<[1], [0], [0], [1], [0, 0, 1, 1], [], []>} : vector<16x64xf32>, vector<64x128xf32>, vector<16x128xf32> -> vector<16x128xf32>
    %16 = arith.mulf %15, %7 : vector<16x128xf32>
    %cst_20 = arith.constant dense<0.000000e+00> : vector<128xf32>
    %17 = vector.multi_reduction <add>, %16, %cst_20 [0] : vector<16x128xf32> to vector<128xf32>
    %18 = vector.shape_cast %17 : vector<128xf32> to vector<1x128xf32>
    %19 = vector.broadcast %18 : vector<1x128xf32> to vector<16x128xf32>
    %20 = arith.addf %13, %19 : vector<16x128xf32>
    %cst_21 = arith.constant 0.000000e+00 : f32
    %21 = vector.broadcast %cst_21 : f32 to vector<16x128xf32>
    %22 = arith.cmpf ogt, %20, %21 : vector<16x128xf32>
    %cst_22 = arith.constant 2.000000e-01 : f32
    %23 = vector.broadcast %cst_22 : f32 to vector<16x128xf32>
    %24 = arith.mulf %23, %20 : vector<16x128xf32>
    %25 = arith.select %22, %20, %24 : vector<16x128xi1>, vector<16x128xf32>
    %cst_23 = arith.constant -1.000000e+30 : f32
    %26 = vector.broadcast %cst_23 : f32 to vector<16x128xf32>
    %27 = arith.select %6, %25, %26 : vector<16x128xi1>, vector<16x128xf32>
    %cst_24 = arith.constant dense<0xFF800000> : vector<16xf32>
    %28 = vector.multi_reduction <maximumf>, %27, %cst_24 [1] : vector<16x128xf32> to vector<16xf32>
    %29 = vector.shape_cast %28 : vector<16xf32> to vector<16x1xf32>
    %30 = vector.broadcast %29 : vector<16x1xf32> to vector<16x128xf32>
    %31 = arith.subf %27, %30 : vector<16x128xf32>
    %32 = math.exp %31 : vector<16x128xf32>
    %cst_25 = arith.constant dense<0.000000e+00> : vector<128x64xf32>
    %33 = tpu.matmul %8, %11, %cst_25 {dimension_numbers = #tpu.dot_dimension_numbers<[1], [0], [0], [1], [0, 0, 1, 1], [], []>} : vector<128x16xf32>, vector<16x64xf32>, vector<128x64xf32> -> vector<128x64xf32>
    %34 = arith.mulf %33, %9 : vector<128x64xf32>
    %cst_26 = arith.constant dense<0.000000e+00> : vector<16x64xf32>
    %35 = tpu.matmul %32, %34, %cst_26 {dimension_numbers = #tpu.dot_dimension_numbers<[1], [0], [0], [1], [0, 0, 1, 1], [], []>} : vector<16x128xf32>, vector<128x64xf32>, vector<16x64xf32> -> vector<16x64xf32>
    %cst_27 = arith.constant dense<0.000000e+00> : vector<16x64xf32>
    %36 = tpu.matmul %32, %9, %cst_27 {dimension_numbers = #tpu.dot_dimension_numbers<[1], [0], [0], [1], [0, 0, 1, 1], [], []>} : vector<16x128xf32>, vector<128x64xf32>, vector<16x64xf32> -> vector<16x64xf32>
    %37 = arith.divf %35, %36 : vector<16x64xf32>
    %c0_28 = arith.constant 0 : index
    %c0_29 = arith.constant 0 : index
    %38 = vector.load %arg7[%c0_28, %c0_29] : memref<1x64xf32, #tpu.memory_space<vmem>>, vector<1x64xf32>
    %39 = vector.broadcast %38 : vector<1x64xf32> to vector<16x64xf32>
    %40 = arith.addf %37, %39 : vector<16x64xf32>
    %cst_30 = arith.constant 0.000000e+00 : f32
    %41 = vector.broadcast %cst_30 : f32 to vector<16x64xf32>
    %42 = arith.cmpf ogt, %40, %41 : vector<16x64xf32>
    %cst_31 = arith.constant 0.000000e+00 : f32
    %43 = vector.broadcast %cst_31 : f32 to vector<16x64xf32>
    %44 = arith.minimumf %40, %43 : vector<16x64xf32>
    %45 = math.exp %44 : vector<16x64xf32>
    %cst_32 = arith.constant 1.000000e+00 : f32
    %46 = vector.broadcast %cst_32 : f32 to vector<16x64xf32>
    %47 = arith.subf %45, %46 : vector<16x64xf32>
    %48 = arith.select %42, %40, %47 : vector<16x64xi1>, vector<16x64xf32>
    %c0_33 = arith.constant 0 : index
    %c0_34 = arith.constant 0 : index
    %49 = vector.load %arg8[%c0_33, %c0_34] : memref<64x64xf32, #tpu.memory_space<vmem>>, vector<64x64xf32>
    %cst_35 = arith.constant dense<0.000000e+00> : vector<16x64xf32>
    %50 = tpu.matmul %48, %49, %cst_35 {dimension_numbers = #tpu.dot_dimension_numbers<[1], [0], [0], [1], [0, 0, 1, 1], [], []>} : vector<16x64xf32>, vector<64x64xf32>, vector<16x64xf32> -> vector<16x64xf32>
    %c0_36 = arith.constant 0 : index
    %c0_37 = arith.constant 0 : index
    %51 = vector.load %arg10[%c0_36, %c0_37] : memref<64x128xf32, #tpu.memory_space<vmem>>, vector<64x128xf32>
    %cst_38 = arith.constant dense<0.000000e+00> : vector<16x128xf32>
    %52 = tpu.matmul %50, %51, %cst_38 {dimension_numbers = #tpu.dot_dimension_numbers<[1], [0], [0], [1], [0, 0, 1, 1], [], []>} : vector<16x64xf32>, vector<64x128xf32>, vector<16x128xf32> -> vector<16x128xf32>
    %c0_39 = arith.constant 0 : index
    %c0_40 = arith.constant 0 : index
    %53 = vector.load %arg9[%c0_39, %c0_40] : memref<64x128xf32, #tpu.memory_space<vmem>>, vector<64x128xf32>
    %cst_41 = arith.constant dense<0.000000e+00> : vector<16x128xf32>
    %54 = tpu.matmul %50, %53, %cst_41 {dimension_numbers = #tpu.dot_dimension_numbers<[1], [0], [0], [1], [0, 0, 1, 1], [], []>} : vector<16x64xf32>, vector<64x128xf32>, vector<16x128xf32> -> vector<16x128xf32>
    %55 = arith.mulf %54, %7 : vector<16x128xf32>
    %cst_42 = arith.constant dense<0.000000e+00> : vector<128xf32>
    %56 = vector.multi_reduction <add>, %55, %cst_42 [0] : vector<16x128xf32> to vector<128xf32>
    %57 = vector.shape_cast %56 : vector<128xf32> to vector<1x128xf32>
    %58 = vector.broadcast %57 : vector<1x128xf32> to vector<16x128xf32>
    %59 = arith.addf %52, %58 : vector<16x128xf32>
    %cst_43 = arith.constant 0.000000e+00 : f32
    %60 = vector.broadcast %cst_43 : f32 to vector<16x128xf32>
    %61 = arith.cmpf ogt, %59, %60 : vector<16x128xf32>
    %cst_44 = arith.constant 2.000000e-01 : f32
    %62 = vector.broadcast %cst_44 : f32 to vector<16x128xf32>
    %63 = arith.mulf %62, %59 : vector<16x128xf32>
    %64 = arith.select %61, %59, %63 : vector<16x128xi1>, vector<16x128xf32>
    %cst_45 = arith.constant -1.000000e+30 : f32
    %65 = vector.broadcast %cst_45 : f32 to vector<16x128xf32>
    %66 = arith.select %6, %64, %65 : vector<16x128xi1>, vector<16x128xf32>
    %cst_46 = arith.constant dense<0xFF800000> : vector<16xf32>
    %67 = vector.multi_reduction <maximumf>, %66, %cst_46 [1] : vector<16x128xf32> to vector<16xf32>
    %68 = vector.shape_cast %67 : vector<16xf32> to vector<16x1xf32>
    %69 = vector.broadcast %68 : vector<16x1xf32> to vector<16x128xf32>
    %70 = arith.subf %66, %69 : vector<16x128xf32>
    %71 = math.exp %70 : vector<16x128xf32>
    %cst_47 = arith.constant dense<0.000000e+00> : vector<128x64xf32>
    %72 = tpu.matmul %8, %50, %cst_47 {dimension_numbers = #tpu.dot_dimension_numbers<[1], [0], [0], [1], [0, 0, 1, 1], [], []>} : vector<128x16xf32>, vector<16x64xf32>, vector<128x64xf32> -> vector<128x64xf32>
    %73 = arith.mulf %72, %9 : vector<128x64xf32>
    %cst_48 = arith.constant dense<0.000000e+00> : vector<16x64xf32>
    %74 = tpu.matmul %71, %73, %cst_48 {dimension_numbers = #tpu.dot_dimension_numbers<[1], [0], [0], [1], [0, 0, 1, 1], [], []>} : vector<16x128xf32>, vector<128x64xf32>, vector<16x64xf32> -> vector<16x64xf32>
    %cst_49 = arith.constant dense<0.000000e+00> : vector<16x64xf32>
    %75 = tpu.matmul %71, %9, %cst_49 {dimension_numbers = #tpu.dot_dimension_numbers<[1], [0], [0], [1], [0, 0, 1, 1], [], []>} : vector<16x128xf32>, vector<128x64xf32>, vector<16x64xf32> -> vector<16x64xf32>
    %76 = arith.divf %74, %75 : vector<16x64xf32>
    %c0_50 = arith.constant 0 : index
    %c0_51 = arith.constant 0 : index
    %77 = vector.load %arg11[%c0_50, %c0_51] : memref<1x64xf32, #tpu.memory_space<vmem>>, vector<1x64xf32>
    %78 = vector.broadcast %77 : vector<1x64xf32> to vector<16x64xf32>
    %79 = arith.addf %76, %78 : vector<16x64xf32>
    %cst_52 = arith.constant 0.000000e+00 : f32
    %80 = vector.broadcast %cst_52 : f32 to vector<16x64xf32>
    %81 = arith.cmpf ogt, %79, %80 : vector<16x64xf32>
    %cst_53 = arith.constant 0.000000e+00 : f32
    %82 = vector.broadcast %cst_53 : f32 to vector<16x64xf32>
    %83 = arith.minimumf %79, %82 : vector<16x64xf32>
    %84 = math.exp %83 : vector<16x64xf32>
    %cst_54 = arith.constant 1.000000e+00 : f32
    %85 = vector.broadcast %cst_54 : f32 to vector<16x64xf32>
    %86 = arith.subf %84, %85 : vector<16x64xf32>
    %87 = arith.select %81, %79, %86 : vector<16x64xi1>, vector<16x64xf32>
    %c0_55 = arith.constant 0 : index
    %c0_56 = arith.constant 0 : index
    %88 = vector.load %arg12[%c0_55, %c0_56] : memref<64x128xf32, #tpu.memory_space<vmem>>, vector<64x128xf32>
    %cst_57 = arith.constant dense<0.000000e+00> : vector<16x128xf32>
    %89 = tpu.matmul %87, %88, %cst_57 {dimension_numbers = #tpu.dot_dimension_numbers<[1], [0], [0], [1], [0, 0, 1, 1], [], []>} : vector<16x64xf32>, vector<64x128xf32>, vector<16x128xf32> -> vector<16x128xf32>
    %c0_58 = arith.constant 0 : index
    %c0_59 = arith.constant 0 : index
    %90 = vector.load %arg14[%c0_58, %c0_59] : memref<128x1xf32, #tpu.memory_space<vmem>>, vector<128x1xf32>
    %cst_60 = arith.constant dense<0.000000e+00> : vector<16x1xf32>
    %91 = tpu.matmul %89, %90, %cst_60 {dimension_numbers = #tpu.dot_dimension_numbers<[1], [0], [0], [1], [0, 0, 1, 1], [], []>} : vector<16x128xf32>, vector<128x1xf32>, vector<16x1xf32> -> vector<16x1xf32>
    %c0_61 = arith.constant 0 : index
    %c0_62 = arith.constant 0 : index
    %92 = vector.load %arg13[%c0_61, %c0_62] : memref<1x128xf32, #tpu.memory_space<vmem>>, vector<1x128xf32>
    %cst_63 = arith.constant dense<0.000000e+00> : vector<1x16xf32>
    %93 = tpu.matmul %92, %89, %cst_63 {dimension_numbers = #tpu.dot_dimension_numbers<[1], [1], [0], [0], [0, 0, 1, 0], [], []>} : vector<1x128xf32>, vector<16x128xf32>, vector<1x16xf32> -> vector<1x16xf32>
    %94 = vector.broadcast %91 : vector<16x1xf32> to vector<16x16xf32>
    %95 = vector.broadcast %93 : vector<1x16xf32> to vector<16x16xf32>
    %96 = arith.addf %94, %95 : vector<16x16xf32>
    %cst_64 = arith.constant 0.000000e+00 : f32
    %97 = vector.broadcast %cst_64 : f32 to vector<16x16xf32>
    %98 = arith.cmpf ogt, %96, %97 : vector<16x16xf32>
    %cst_65 = arith.constant 2.000000e-01 : f32
    %99 = vector.broadcast %cst_65 : f32 to vector<16x16xf32>
    %100 = arith.mulf %99, %96 : vector<16x16xf32>
    %101 = arith.select %98, %96, %100 : vector<16x16xi1>, vector<16x16xf32>
    %cst_66 = arith.constant -1.000000e+30 : f32
    %102 = vector.broadcast %cst_66 : f32 to vector<16x16xf32>
    %103 = arith.select %3, %101, %102 : vector<16x16xi1>, vector<16x16xf32>
    %cst_67 = arith.constant dense<0xFF800000> : vector<16xf32>
    %104 = vector.multi_reduction <maximumf>, %103, %cst_67 [1] : vector<16x16xf32> to vector<16xf32>
    %105 = vector.shape_cast %104 : vector<16xf32> to vector<16x1xf32>
    %106 = vector.broadcast %105 : vector<16x1xf32> to vector<16x16xf32>
    %107 = arith.subf %103, %106 : vector<16x16xf32>
    %108 = math.exp %107 : vector<16x16xf32>
    %cst_68 = arith.constant dense<0.000000e+00> : vector<16xf32>
    %109 = vector.multi_reduction <add>, %108, %cst_68 [1] : vector<16x16xf32> to vector<16xf32>
    %110 = vector.shape_cast %109 : vector<16xf32> to vector<16x1xf32>
    %cst_69 = arith.constant dense<0.000000e+00> : vector<16x128xf32>
    %111 = tpu.matmul %108, %89, %cst_69 {dimension_numbers = #tpu.dot_dimension_numbers<[1], [0], [0], [1], [0, 0, 1, 1], [], []>} : vector<16x16xf32>, vector<16x128xf32>, vector<16x128xf32> -> vector<16x128xf32>
    %112 = vector.broadcast %110 : vector<16x1xf32> to vector<16x128xf32>
    %113 = arith.divf %111, %112 : vector<16x128xf32>
    %c0_70 = arith.constant 0 : index
    %c0_71 = arith.constant 0 : index
    %114 = vector.load %arg15[%c0_70, %c0_71] : memref<1x128xf32, #tpu.memory_space<vmem>>, vector<1x128xf32>
    %115 = vector.broadcast %114 : vector<1x128xf32> to vector<16x128xf32>
    %116 = arith.addf %113, %115 : vector<16x128xf32>
    %c0_72 = arith.constant 0 : index
    %c0_73 = arith.constant 0 : index
    %117 = vector.load %arg16[%c0_72, %c0_73] : memref<1x128xf32, #tpu.memory_space<vmem>>, vector<1x128xf32>
    %118 = vector.broadcast %117 : vector<1x128xf32> to vector<16x128xf32>
    %119 = arith.addf %116, %118 : vector<16x128xf32>
    %cst_74 = arith.constant dense<0xFF800000> : vector<16xf32>
    %120 = vector.multi_reduction <maximumf>, %119, %cst_74 [1] : vector<16x128xf32> to vector<16xf32>
    %121 = vector.shape_cast %120 : vector<16xf32> to vector<16x1xf32>
    %122 = vector.broadcast %121 : vector<16x1xf32> to vector<16x128xf32>
    %123 = arith.subf %119, %122 : vector<16x128xf32>
    %124 = math.exp %123 : vector<16x128xf32>
    %cst_75 = arith.constant dense<0.000000e+00> : vector<16xf32>
    %125 = vector.multi_reduction <add>, %124, %cst_75 [1] : vector<16x128xf32> to vector<16xf32>
    %126 = vector.shape_cast %125 : vector<16xf32> to vector<16x1xf32>
    %127 = math.log %126 : vector<16x1xf32>
    %128 = vector.broadcast %127 : vector<16x1xf32> to vector<16x128xf32>
    %129 = arith.subf %123, %128 : vector<16x128xf32>
    %c0_76 = arith.constant 0 : index
    %c0_77 = arith.constant 0 : index
    %130 = vector.load %arg20[%c0_76, %c0_77] : memref<16x128xf32, #tpu.memory_space<vmem>>, vector<16x128xf32>
    tpu.vector_store %arg20[%c0_76, %c0_77], %129 {strides = array<i32>} : memref<16x128xf32, #tpu.memory_space<vmem>>, vector<16x128xf32>,
    return
  }
  func.func @transform_0(%arg0: i32) -> (i32, i32) {
    %c0_i32 = arith.constant 0 : i32
    %c0_i32_0 = arith.constant 0 : i32
    %c0_i32_1 = arith.constant 0 : i32
    return %c0_i32, %c0_i32_0 : i32, i32
  }
  func.func @transform_1(%arg0: i32) -> (i32, i32) {
    %c0_i32 = arith.constant 0 : i32
    %c0_i32_0 = arith.constant 0 : i32
    %c0_i32_1 = arith.constant 0 : i32
    return %c0_i32, %c0_i32_0 : i32, i32
  }
  func.func @transform_2(%arg0: i32) -> (i32, i32) {
    %c0_i32 = arith.constant 0 : i32
    %c0_i32_0 = arith.constant 0 : i32
    %c0_i32_1 = arith.constant 0 : i32
    return %c0_i32, %c0_i32_0 : i32, i32
  }
  func.func @transform_3(%arg0: i32) -> (i32, i32) {
    %c0_i32 = arith.constant 0 : i32
    %c0_i32_0 = arith.constant 0 : i32
    %c0_i32_1 = arith.constant 0 : i32
    return %c0_i32, %c0_i32_0 : i32, i32
  }
  func.func @transform_4(%arg0: i32) -> (i32, i32) {
    %c0_i32 = arith.constant 0 : i32
    %c0_i32_0 = arith.constant 0 : i32
    %c0_i32_1 = arith.constant 0 : i32
    return %c0_i32, %c0_i32_0 : i32, i32
  }
  func.func @transform_5(%arg0: i32) -> (i32, i32) {
    %c0_i32 = arith.constant 0 : i32
    %c0_i32_0 = arith.constant 0 : i32
    %c0_i32_1 = arith.constant 0 : i32
    return %c0_i32, %c0_i32_0 : i32, i32
  }
  func.func @transform_6(%arg0: i32) -> (i32, i32) {
    %c0_i32 = arith.constant 0 : i32
    %c0_i32_0 = arith.constant 0 : i32
    %c0_i32_1 = arith.constant 0 : i32
    return %c0_i32, %c0_i32_0 : i32, i32
  }
  func.func @transform_7(%arg0: i32) -> (i32, i32) {
    %c0_i32 = arith.constant 0 : i32
    %c0_i32_0 = arith.constant 0 : i32
    %c0_i32_1 = arith.constant 0 : i32
    return %c0_i32, %c0_i32_0 : i32, i32
  }
  func.func @transform_8(%arg0: i32) -> (i32, i32) {
    %c0_i32 = arith.constant 0 : i32
    %c0_i32_0 = arith.constant 0 : i32
    %c0_i32_1 = arith.constant 0 : i32
    return %c0_i32, %c0_i32_0 : i32, i32
  }
  func.func @transform_9(%arg0: i32) -> (i32, i32) {
    %c0_i32 = arith.constant 0 : i32
    %c0_i32_0 = arith.constant 0 : i32
    %c0_i32_1 = arith.constant 0 : i32
    return %c0_i32, %c0_i32_0 : i32, i32
  }
  func.func @transform_10(%arg0: i32) -> (i32, i32) {
    %c0_i32 = arith.constant 0 : i32
    %c0_i32_0 = arith.constant 0 : i32
    %c0_i32_1 = arith.constant 0 : i32
    return %c0_i32, %c0_i32_0 : i32, i32
  }
  func.func @transform_11(%arg0: i32) -> (i32, i32) {
    %c0_i32 = arith.constant 0 : i32
    %c0_i32_0 = arith.constant 0 : i32
    %c0_i32_1 = arith.constant 0 : i32
    return %c0_i32, %c0_i32_0 : i32, i32
  }
  func.func @transform_12(%arg0: i32) -> (i32, i32) {
    %c0_i32 = arith.constant 0 : i32
    %c0_i32_0 = arith.constant 0 : i32
    %c0_i32_1 = arith.constant 0 : i32
    return %c0_i32, %c0_i32_0 : i32, i32
  }
  func.func @transform_13(%arg0: i32) -> (i32, i32) {
    %c0_i32 = arith.constant 0 : i32
    %c0_i32_0 = arith.constant 0 : i32
    %c0_i32_1 = arith.constant 0 : i32
    return %c0_i32, %c0_i32_0 : i32, i32
  }
  func.func @transform_14(%arg0: i32) -> (i32, i32) {
    %c0_i32 = arith.constant 0 : i32
    %c0_i32_0 = arith.constant 0 : i32
    %c0_i32_1 = arith.constant 0 : i32
    return %c0_i32, %c0_i32_0 : i32, i32
  }
  func.func @transform_15(%arg0: i32) -> (i32, i32) {
    %c0_i32 = arith.constant 0 : i32
    %c0_i32_0 = arith.constant 0 : i32
    %c0_i32_1 = arith.constant 0 : i32
    return %c0_i32, %c0_i32_0 : i32, i32
  }
  func.func @transform_16(%arg0: i32) -> (i32, i32) {
    %c0_i32 = arith.constant 0 : i32
    %c0_i32_0 = arith.constant 0 : i32
    %c0_i32_1 = arith.constant 0 : i32
    return %c0_i32, %c0_i32_0 : i32, i32
  }
  func.func @transform_17(%arg0: i32) -> (i32, i32) {
    %c0_i32 = arith.constant 0 : i32
    %c0_i32_0 = arith.constant 0 : i32
    %c0_i32_1 = arith.constant 0 : i32
    return %c0_i32, %c0_i32_0 : i32, i32
  }
  func.func @transform_18(%arg0: i32) -> (i32, i32) {
    %c0_i32 = arith.constant 0 : i32
    %c0_i32_0 = arith.constant 0 : i32
    %c0_i32_1 = arith.constant 0 : i32
    return %c0_i32, %c0_i32_0 : i32, i32
  }
  func.func @transform_19(%arg0: i32) -> (i32, i32) {
    %c0_i32 = arith.constant 0 : i32
    %c0_i32_0 = arith.constant 0 : i32
    %c0_i32_1 = arith.constant 0 : i32
    return %c0_i32, %c0_i32_0 : i32, i32
  }
}

</mosaic_0001>

<bundles_post_ra>
// kernel: tpu_custom_call.1
= control target key start
LH: loop header
LB: loop body
LE: loop exit
PB: predicated region body
PF: predicated region fallthrough
CT: control target
= control target key end

     0   :  { %s2111_s0 = inlined_call_operand.hbm [shape: f32[16,16], index: 0, kind: input, shape index: {}]   ;;  %s2112_s1 = inlined_call_operand.hbm [shape: s8[16,16], index: 1, kind: input, shape index: {}]   ;;  %s2113_s2 = inlined_call_operand.hbm [shape: s8[16,128], index: 2, kind: input, shape index: {}]   ;;  %s2114_s3 = inlined_call_operand.hbm [shape: f32[16,64], index: 3, kind: input, shape index: {}]   ;;  %s2115_s4 = inlined_call_operand.vmem [shape: f32[64,128], index: 4, kind: input, shape index: {}]   ;;  %s2116_s5 = inlined_call_operand.vmem [shape: f32[64,128], index: 5, kind: input, shape index: {}]   ;;  %s2117_s6 = inlined_call_operand.vmem [shape: f32[1,64], index: 6, kind: input, shape index: {}]   ;;  %s2118_s7 = inlined_call_operand.vmem [shape: f32[64,64], index: 7, kind: input, shape index: {}]   ;;  %s2119_s8 = inlined_call_operand.vmem [shape: f32[64,128], index: 8, kind: input, shape index: {}]   ;;  %s2120_s9 = inlined_call_operand.vmem [shape: f32[64,128], index: 9, kind: input, shape index: {}]   ;;  %s2121_s10 = inlined_call_operand.vmem [shape: f32[1,64], index: 10, kind: input, shape index: {}]   ;;  %s2122_s11 = inlined_call_operand.vmem [shape: f32[64,128], index: 11, kind: input, shape index: {}]   ;;  %s2123_s12 = inlined_call_operand.vmem [shape: f32[1,128], index: 12, kind: input, shape index: {}]   ;;  %s2124_s13 = inlined_call_operand.vmem [shape: f32[128,1], index: 13, kind: input, shape index: {}]   ;;  %s2125_s14 = inlined_call_operand.vmem [shape: f32[1,128], index: 14, kind: input, shape index: {}]   ;;  %s2126_s15 = inlined_call_operand.vmem [shape: f32[1,128], index: 15, kind: input, shape index: {}]   ;;  %s2127_s16 = inlined_call_operand.hbm [shape: f32[16,128], index: 16, kind: input, shape index: {}]   ;;  %s2128_s17 = inlined_call_operand.vmem [shape: f32[128,16], index: 17, kind: input, shape index: {}]   ;;  %s2129_s18 = inlined_call_operand.vmem [shape: f32[128,64], index: 18, kind: input, shape index: {}]   ;;  %s2130_s19 = inlined_call_operand.hbm [shape: f32[16,128], index: 19, kind: output, shape index: {}]  }
   0x1   :  { %2131 = sst [smem:[#allocation16_spill]] %s2111_s0 }
   0x2   :  { %2132 = sst [smem:[#allocation17_spill]] %s2112_s1 }
   0x3   :  { %2133 = sst [smem:[#allocation18_spill]] %s2113_s2 }
   0x4   :  { %2134 = sst [smem:[#allocation19_spill]] %s2114_s3 }
   0x5   :  { %2135 = sst [smem:[#allocation20_spill]] %s2125_s14 }
   0x6   :  { %2136 = sst [smem:[#allocation21_spill]] %s2126_s15 }
   0x7   :  { %2137 = sst [smem:[#allocation22_spill]] %s2130_s19 }
   0x8   :  { %24 = vsyncpa [#allocation3], 0 }
   0x9   :  { %25 = vsyncpa [#allocation6], 0 }
   0xa   :  { %26 = vsyncpa [#allocation9], 0  ;;  %s2138_s20 = sld [smem:[#allocation17_spill]] }
  0x10   :  { %s45_s21 = sshll.u32 %s2138_s20, 4  ;;  %s46_s21 = int_to_ptr.hbm [resolvable:$true] %s45_s21 }
  0x11   :  { %27 = vsyncpa [#allocation4], 0  ;;  %s1384_s1 = smov [#allocation5]   ;;  %s1385_s2 = smov 32  }
  0x12   :  { %s47_s22 = sshll.u32 %s1384_s1, 4  ;;  %s1386_s23 = smov 2   ;;  %s48_s22 = int_to_ptr.vmem [resolvable:$true] %s47_s22 }
  0x13   :  { %53 = dma.hbm_to_vmem [thread:$0]  %s46_s21, 64, %s48_s22, [#allocation6], %s1385_s2, %s1385_s2, %s1386_s23  }
  0x14   :  { %s2139_s3 = sld [smem:[#allocation19_spill]]  ;;  %s1387_s27 = smov [#allocation8]  }
  0x15   :  { %s73_s28 = sshll.u32 %s1387_s27, 4  ;;  %s2140_s15 = sld [smem:[#allocation16_spill]]  ;;  %s74_s28 = int_to_ptr.vmem [resolvable:$true] %s73_s28 }
  0x16   :  { %s1388_s30 = smov 128   ;;  %s1389_s20 = smov 8  }
  0x17   :  { %s2141_s22 = sld [smem:[#allocation18_spill]]  ;;  %s1390_s25 = smov [#allocation2]  }
  0x18   :  { %s108_s14 = sshll.u32 %s2127_s16, 4  ;;  %s109_s14 = int_to_ptr.hbm [resolvable:$true] %s108_s14 }
  0x1a   :  { %s71_s26 = sshll.u32 %s2139_s3, 4  ;;  %s34_s3 = sshll.u32 %s1390_s25, 4  ;;  %s72_s26 = int_to_ptr.hbm [resolvable:$true] %s71_s26  ;;  %s35_s3 = int_to_ptr.vmem [resolvable:$true] %s34_s3 }
  0x1b   :  { %s32_s0 = sshll.u32 %s2140_s15, 4  ;;  %s1391_s15 = smov [#allocation7]   ;;  %s33_s0 = int_to_ptr.hbm [resolvable:$true] %s32_s0 }
  0x1c   :  { %79 = dma.hbm_to_vmem [thread:$0]  %s72_s26, 256, %s74_s28, [#allocation9], %s1388_s30, %s1388_s30, %s1389_s20  }
  0x1d   :  { %s58_s24 = sshll.u32 %s2141_s22, 4  ;;  %s60_s19 = sshll.u32 %s1391_s15, 4  ;;  %s59_s24 = int_to_ptr.hbm [resolvable:$true] %s58_s24  ;;  %s61_s19 = int_to_ptr.vmem [resolvable:$true] %s60_s19 }
  0x1e   :  { %40 = dma.hbm_to_vmem [thread:$0]  %s33_s0, 256, %s35_s3, [#allocation3], %s1388_s30, %s1388_s30, %s1389_s20  }
  0x1f   :  { %66 = dma.hbm_to_vmem [thread:$0]  %s59_s24, 64, %s61_s19, [#allocation6], %s1385_s2, %s1385_s2, %s1386_s23  }
  0x20   :  { %s1392_s26 = smov [#allocation10]  }
  0x21   :  { %s110_s28 = sshll.u32 %s1392_s26, 4  ;;  %s111_s28 = int_to_ptr.vmem [resolvable:$true] %s110_s28 }
  0x22   :  { %116 = dma.hbm_to_vmem [thread:$0]  %s109_s14, 256, %s111_s28, [#allocation9], %s1388_s30, %s1388_s30, %s1389_s20  }
  0x23   :  { %1376 = dma.done.wait [#allocation3], 256  }
  0x24   :  { %1377 = vsyncadd [#allocation3], 4294967040 }
  0x25   :  { %1378 = dma.done.wait [#allocation6], 128  }
  0x26   :  { %1379 = vsyncadd [#allocation6], 4294967168 }
  0x27   :  { %1380 = dma.done.wait [#allocation9], 512  }
  0x28   :  { %1381 = vsyncadd [#allocation9], 4294966784  ;;  %v188_v0 = vld [vmem:[#allocation8 + $0x8] sm:$0xff]  ;;  %v187_v1 = vld [vmem:[#allocation8] sm:$0xff]  ;;  %vm189_vm0 = vcmask 130048   ;;  %vm235_vm1 = vcmask 523264  }
  0x29   :  { %210 = vmatpush.msra.mxu0 %v188_v0  ;;  %v143_v2 = vld [vmem:[#allocation2] sm:$0xff]  ;;  %v226_v3 = vld [vmem:[%s2116_s5 + $0x38] sm:$0xff]  ;;  %v225_v5 = vld [vmem:[%s2116_s5 + $0x30] sm:$0xff]  ;;  %v1393_v36 = vmov 0   ;;  %s2148_s14 = sld [smem:[#allocation20_spill]]  ;;  %s1394_s21 = smov [#allocation11]  }
  0x2a   :  { %v234_v4 = vld [vmem:[%s2115_s4 + $0x38] sm:$0xff]  ;;  %282 = vmatpush.msra.mxu2 %v226_v3  ;;  %v224_v6 = vld [vmem:[%s2116_s5 + $0x28] sm:$0xff]  ;;  %v233_v7 = vld [vmem:[%s2115_s4 + $0x30] sm:$0xff]  ;;  %1186 = vset.pattern.permute.xlu2 %v1393_v36  ;;  %s1090_s1 = sshll.u32 %s1394_s21, 4  ;;  %s1091_s1 = int_to_ptr.vmem [resolvable:$true] %s1090_s1 }
  0x2b   :  { %211 = vmatpush.msra.mxu0 %v187_v1  ;;  %v232_v8 = vld [vmem:[%s2115_s4 + $0x28] sm:$0xff]  ;;  %v223_v9 = vld [vmem:[%s2116_s5 + $0x20] sm:$0xff]  ;;  %v222_v10 = vld [vmem:[%s2116_s5 + $0x18] sm:$0xff]  ;;  %1187 = vset.pattern.permute.xlu0 %v1393_v36 }
  0x2c   :  { %1107 = vmatmul.msk.f32.vlgmr.msra.gmra.mxu0 %vm189_vm0, %v143_v2  ;;  %283 = vmatpush.msra.mxu2 %v225_v5  ;;  %v231_v11 = vld [vmem:[%s2115_s4 + $0x20] sm:$0xff]  ;;  %v144_v12 = vld [vmem:[#allocation2 + $0x8] sm:$0xff]  ;;  %v221_v13 = vld [vmem:[%s2116_s5 + $0x10] sm:$0xff] }
  0x2d   :  { %250 = vmatpush.msrb.mxu0 %v234_v4  ;;  %v230_v14 = vld [vmem:[%s2115_s4 + $0x18] sm:$0xff]  ;;  %v220_v15 = vld [vmem:[%s2116_s5 + $0x8] sm:$0xff]  ;;  %v229_v16 = vld [vmem:[%s2115_s4 + $0x10] sm:$0xff] }
  0x2e   :  { %284 = vmatpush.msra.mxu2 %v224_v6  ;;  %v228_v17 = vld [vmem:[%s2115_s4 + $0x8] sm:$0xff]  ;;  %v227_v18 = vld [vmem:[%s2115_s4] sm:$0xff]  ;;  %v1590_v24 = vld [vmem:[%s2128_s17 + $0x10] sm:$0xff] }
  0x2f   :  { %251 = vmatpush.msrb.mxu0 %v233_v7  ;;  %v219_v19 = vld [vmem:[%s2116_s5] sm:$0xff]  ;;  %v1583_v23 = vld [vmem:[%s2128_s17 + $0x8] sm:$0xff]  ;;  %v1597_v25 = vld [vmem:[%s2128_s17 + $0x18] sm:$0xff] }
  0x30   :  { %285 = vmatpush.msra.mxu2 %v223_v9  ;;  %v1576_v22 = vld [vmem:[%s2128_s17] sm:$0xff]  ;;  %v1611_v27 = vld [vmem:[%s2128_s17 + $0x28] sm:$0xff]  ;;  %v1618_v28 = vld [vmem:[%s2128_s17 + $0x30] sm:$0xff] }
  0x31   :  { %252 = vmatpush.msrb.mxu0 %v232_v8  ;;  %v1604_v26 = vld [vmem:[%s2128_s17 + $0x20] sm:$0xff]  ;;  %v1625_v29 = vld [vmem:[%s2128_s17 + $0x38] sm:$0xff]  ;;  %v1639_v31 = vld [vmem:[%s2128_s17 + $0x48] sm:$0xff] }
  0x32   :  { %286 = vmatpush.msra.mxu2 %v222_v10  ;;  %v1632_v30 = vld [vmem:[%s2128_s17 + $0x40] sm:$0xff]  ;;  %v1646_v32 = vld [vmem:[%s2128_s17 + $0x50] sm:$0xff]  ;;  %v1653_v33 = vld [vmem:[%s2128_s17 + $0x58] sm:$0xff] }
  0x33   :  { %253 = vmatpush.msrb.mxu0 %v231_v11  ;;  %v1660_v34 = vld [vmem:[%s2128_s17 + $0x60] sm:$0xff]  ;;  %v1667_v35 = vld [vmem:[%s2128_s17 + $0x68] sm:$0xff]  ;;  %v1676_v37 = vld [vmem:[%s2128_s17 + $0x70] sm:$0xff] }
  0x34   :  { %1108 = vmatmul.msk.f32.gmra.mxu0 %vm189_vm0, %v144_v12  ;;  %287 = vmatpush.msra.mxu2 %v221_v13  ;;  %v1683_v39 = vld [vmem:[%s2128_s17 + $0x78] sm:$0xff]  ;;  %v1685_v40 = vld [vmem:[#allocation10] sm:$0xff]  ;;  %v1687_v41 = vld [vmem:[#allocation10 + $0x8] sm:$0xff]  ;;  %s2150_s17 = sld [smem:[#allocation22_spill]] }
  0x35   :  { %254 = vmatpush.msrb.mxu0 %v230_v14  ;;  %v149_v47 = vld [vmem:[#allocation7] sm:$0x3]  ;;  %v150_v55 = vld [vmem:[#allocation7 + $0x2] sm:$0x3] }
  0x36   :  { %288 = vmatpush.msra.mxu2 %v220_v15  ;;  %vm151_vm2 = vnez %v149_v47  ;;  %vm152_vm3 = vnez %v150_v55  ;;  %v1790_v47 = vld [vmem:[%s2129_s18 + $0x28] sm:$0xff] }
  0x37   :  { %255 = vmatpush.msrb.mxu0 %v229_v16  ;;  %v303_v53 = vsel %vm151_vm2, 16843009, %v1393_v36  ;;  %v304_v0 = vsel %vm152_vm3, 16843009, %v1393_v36  ;;  %v1730_v16 = vld [vmem:[%s2129_s18 + $0x78] sm:$0xff] }
  0x38   :  { %289 = vmatpush.msra.mxu2 %v219_v19  ;;  %v305_v57 = vunpack.c.0.s8 %v303_v53  ;;  %v306_v4 = vunpack.c.0.s8 %v304_v0  ;;  %v1748_v19 = vld [vmem:[%s2129_s18 + $0x60] sm:$0xff]  ;;  %v1814_v53 = vld [vmem:[%s2129_s18 + $0x8] sm:$0xff] }
  0x39   :  { %256 = vmatpush.msrb.mxu0 %v228_v17  ;;  %v1735_v17 = vld [vmem:[%s2129_s18 + $0x70] sm:$0xff] }
  0x3a   :  { %vm1698_vm5 = vcmp.ne.s32.totalorder %v305_v57, 0  ;;  %vm1710_vm7 = vcmp.ne.s32.totalorder %v306_v4, 0  ;;  %s1092_s25 = sshll.u32 %s2150_s17, 4  ;;  %s1093_s25 = int_to_ptr.hbm [resolvable:$true] %s1092_s25 }
  0x3b   :  { %257 = vmatpush.msrb.mxu0 %v227_v18  ;;  %v1742_v18 = vld [vmem:[%s2129_s18 + $0x68] sm:$0xff] }
  0x3d   :  { %473 = vmatpush.msra.mxu0 %v1730_v16 }
  0x3f   :  { %474 = vmatpush.msra.mxu0 %v1735_v17 }
  0x41   :  { %475 = vmatpush.msra.mxu0 %v1742_v18 }
  0x43   :  { %476 = vmatpush.msra.mxu0 %v1748_v19 }
  0xa9   :  { %v213_v20 = vpop.f32.mrf.mxu0 }
  0xaa   :  { %1109 = vmatmul.msk.f32.vlgmr.msrb.gmra.mxu0 %vm235_vm1, %v213_v20  ;;  %1111 = vmatmul.msk.f32.vlgmr.msra.gmra.mxu2 %vm235_vm1, %v213_v20 }
  0xb1   :  { %v216_v21 = vpop.f32.mrf.mxu0 }
  0xb2   :  { %1110 = vmatmul.msk.f32.gmra.mxu0 %vm235_vm1, %v216_v21  ;;  %1112 = vmatmul.msk.f32.gmra.mxu2 %vm235_vm1, %v216_v21 }
  0xb3   :  { %383 = vmatpush.msra.mxu3 %v216_v21  ;;  %v1754_v21 = vld [vmem:[%s2129_s18 + $0x58] sm:$0xff] }
  0xb4   :  { %477 = vmatpush.msra.mxu0 %v1754_v21 }
  0xb5   :  { %384 = vmatpush.msra.mxu3 %v213_v20 }
  0xb6   :  { %1113 = vmatmul.msk.f32.vlgmr.msra.gmra.mxu3 %vm189_vm0, %v1576_v22 }
  0xbe   :  { %1114 = vmatmul.msk.f32.gmra.mxu3 %vm189_vm0, %v1583_v23 }
  0xc6   :  { %1115 = vmatmul.msk.f32.gmra.mxu3 %vm189_vm0, %v1590_v24 }
  0xce   :  { %1116 = vmatmul.msk.f32.gmra.mxu3 %vm189_vm0, %v1597_v25 }
  0xd6   :  { %1117 = vmatmul.msk.f32.gmra.mxu3 %vm189_vm0, %v1604_v26 }
  0xde   :  { %1118 = vmatmul.msk.f32.gmra.mxu3 %vm189_vm0, %v1611_v27 }
  0xe6   :  { %1119 = vmatmul.msk.f32.gmra.mxu3 %vm189_vm0, %v1618_v28 }
  0xee   :  { %1120 = vmatmul.msk.f32.gmra.mxu3 %vm189_vm0, %v1625_v29 }
  0xf6   :  { %1121 = vmatmul.msk.f32.gmra.mxu3 %vm189_vm0, %v1632_v30 }
  0xfe   :  { %1122 = vmatmul.msk.f32.gmra.mxu3 %vm189_vm0, %v1639_v31 }
 0x106   :  { %1123 = vmatmul.msk.f32.gmra.mxu3 %vm189_vm0, %v1646_v32 }
 0x10e   :  { %1124 = vmatmul.msk.f32.gmra.mxu3 %vm189_vm0, %v1653_v33 }
 0x116   :  { %1125 = vmatmul.msk.f32.gmra.mxu3 %vm189_vm0, %v1660_v34 }
 0x11e   :  { %1126 = vmatmul.msk.f32.gmra.mxu3 %vm189_vm0, %v1667_v35 }
 0x126   :  { %1127 = vmatmul.msk.f32.gmra.mxu3 %vm189_vm0, %v1676_v37 }
 0x127   :  { %v259_v38 = vpop.f32.mrf.mxu0 }
 0x128   :  { %v265_v43 = vmul.f32 %v259_v38, %v1685_v40  ;;  %v1760_v38 = vld [vmem:[%s2129_s18 + $0x50] sm:$0xff] }
 0x129   :  { %478 = vmatpush.msra.mxu0 %v1760_v38 }
 0x12d   :  { %v291_v49 = vpop.f32.mrf.mxu2 }
 0x12e   :  { %1128 = vmatmul.msk.f32.gmra.mxu3 %vm189_vm0, %v1683_v39 }
 0x12f   :  { %v262_v42 = vpop.f32.mrf.mxu0 }
 0x130   :  { %v266_v44 = vmul.f32 %v262_v42, %v1687_v41  ;;  %v1766_v42 = vld [vmem:[%s2129_s18 + $0x48] sm:$0xff] }
 0x131   :  { %479 = vmatpush.msra.mxu0 %v1766_v42 }
 0x132   :  { %v267_v45 = vadd.f32 %v266_v44, %v265_v43  ;;  %v1772_v43 = vld [vmem:[%s2129_s18 + $0x40] sm:$0xff] }
 0x133   :  { %480 = vmatpush.msra.mxu0 %v1772_v43 }
 0x134   :  { %v268_v46 = vrot.slane %v267_v45, 4 }
 0x135   :  { %v294_v59 = vpop.f32.mrf.mxu2 }
 0x136   :  { %v269_v48 = vadd.f32 %v268_v46, %v267_v45  ;;  %v1778_v45 = vld [vmem:[%s2129_s18 + $0x38] sm:$0xff]  ;;  %v1784_v46 = vld [vmem:[%s2129_s18 + $0x30] sm:$0xff] }
 0x137   :  { %481 = vmatpush.msra.mxu0 %v1778_v45 }
 0x138   :  { %v270_v50 = vrot.slane %v269_v48, 2 }
 0x139   :  { %v1693_v51 = vpop.f32.mrf.mxu3  ;;  %482 = vmatpush.msra.mxu0 %v1784_v46 }
 0x13a   :  { %v271_v52 = vadd.f32 %v270_v50, %v269_v48  ;;  %v1796_v48 = vld [vmem:[%s2129_s18 + $0x20] sm:$0xff]  ;;  %v1802_v50 = vld [vmem:[%s2129_s18 + $0x18] sm:$0xff] }
 0x13b   :  { %483 = vmatpush.msra.mxu0 %v1790_v47 }
 0x13c   :  { %v272_v54 = vrot.slane %v271_v52, 1 }
 0x13d   :  { %484 = vmatpush.msra.mxu0 %v1796_v48 }
 0x13e   :  { %v273_v56 = vadd.f32 %v272_v54, %v271_v52  ;;  %v1808_v52 = vld [vmem:[%s2129_s18 + $0x10] sm:$0xff]  ;;  %v1820_v54 = vld [vmem:[%s2129_s18] sm:$0xff] }
 0x13f   :  { %485 = vmatpush.msra.mxu0 %v1802_v50 }
 0x140   :  { %v292_v58 = vadd.f32 %v291_v49, %v273_v56  ;;  %v295_v61 = vadd.f32 %v294_v59, %v273_v56 }
 0x141   :  { %v1696_v60 = vpop.f32.mrf.mxu3  ;;  %486 = vmatpush.msra.mxu0 %v1808_v52 }
 0x142   :  { %vm297_vm4 = vcmp.gt.f32.partialorder %v292_v58, 0.0  ;;  %v299_v62 = vmul.f32 0.2, %v292_v58  ;;  %v300_v3 = vmul.f32 0.2, %v295_v61  ;;  %vm298_vm6 = vcmp.gt.f32.partialorder %v295_v61, 0.0 }
 0x143   :  { %487 = vmatpush.msra.mxu0 %v1814_v53 }
 0x144   :  { %v301_v1 = vsel %vm297_vm4, %v292_v58, %v299_v62  ;;  %v302_v6 = vsel %vm298_vm6, %v295_v61, %v300_v3 }
 0x145   :  { %v1705_v2 = vsel %vm1698_vm5, %v301_v1, -1e+30  ;;  %v1716_v8 = vsel %vm1710_vm7, %v302_v6, -1e+30  ;;  %488 = vmatpush.msra.mxu0 %v1820_v54 }
 0x146   :  { %311 = vmax.xlane.f32.xlu0 %v1705_v2 }
 0x149   :  { %v1708_v5 = vpop.f32.mrf.mxu3 }
 0x14e   :  { %313 = vmax.xlane.f32.xlu0 %v1716_v8 }
 0x151   :  { %v1719_v9 = vpop.f32.mrf.mxu3 }
 0x159   :  { %v1721_v10 = vpop.f32.mrf.mxu3 }
 0x161   :  { %v1723_v11 = vpop.f32.mrf.mxu3 }
 0x169   :  { %v1725_v12 = vpop.f32.mrf.mxu3 }
 0x171   :  { %v407_v13 = vpop.f32.mrf.mxu3 }
 0x179   :  { %v410_v14 = vpop.f32.mrf.mxu3 }
 0x181   :  { %v413_v15 = vpop.f32.mrf.mxu3 }
 0x189   :  { %v416_v20 = vpop.f32.mrf.mxu3 }
 0x18a   :  { %v444_v4 = vmul.f32 %v416_v20, %v1760_v38 }
 0x191   :  { %v419_v44 = vpop.f32.mrf.mxu3 }
 0x192   :  { %v445_v1 = vmul.f32 %v419_v44, %v1754_v21 }
 0x199   :  { %v422_v49 = vpop.f32.mrf.mxu3 }
 0x19a   :  { %v446_v62 = vmul.f32 %v422_v49, %v1748_v19  ;;  %v441_v49 = vmul.f32 %v407_v13, %v1778_v45  ;;  %v437_v13 = vmul.f32 %v1719_v9, %v1802_v50  ;;  %v551_v9 = vld [vmem:[%s2118_s7 + $0x38] sm:$0xff] }
 0x19b   :  { %566 = vmatpush.msrb.mxu2 %v551_v9 }
 0x1a1   :  { %v425_v55 = vpop.f32.mrf.mxu3 }
 0x1a2   :  { %v447_v61 = vmul.f32 %v425_v55, %v1742_v18  ;;  %v442_v55 = vmul.f32 %v410_v14, %v1772_v43  ;;  %v438_v14 = vmul.f32 %v1721_v10, %v1796_v48  ;;  %v547_v10 = vld [vmem:[%s2118_s7 + $0x18] sm:$0xff] }
 0x1a9   :  { %v428_v56 = vpop.f32.mrf.mxu3 }
 0x1aa   :  { %v448_v59 = vmul.f32 %v428_v56, %v1735_v17 }
 0x1b1   :  { %v431_v57 = vpop.f32.mrf.mxu3 }
 0x1b2   :  { %v449_v58 = vmul.f32 %v431_v57, %v1730_v16  ;;  %v443_v57 = vmul.f32 %v413_v15, %v1766_v42  ;;  %v439_v15 = vmul.f32 %v1723_v11, %v1790_v47  ;;  %v434_v11 = vmul.f32 %v1693_v51, %v1820_v54  ;;  %v548_v51 = vld [vmem:[%s2118_s7 + $0x20] sm:$0xff] }
 0x1b4   :  { %450 = vmatpush.msrb.mxu3 %v449_v58 }
 0x1b6   :  { %451 = vmatpush.msrb.mxu3 %v448_v59  ;;  %v435_v59 = vmul.f32 %v1696_v60, %v1814_v53  ;;  %v549_v60 = vld [vmem:[%s2118_s7 + $0x28] sm:$0xff] }
 0x1b8   :  { %452 = vmatpush.msrb.mxu3 %v447_v61 }
 0x1b9   :  { %v312_v0 = vpop.xlane.xlu0 %311 }
 0x1ba   :  { %453 = vmatpush.msrb.mxu3 %v446_v62  ;;  %v315_v3 = vsub.f32 %v1705_v2, %v312_v0  ;;  %v440_v2 = vmul.f32 %v1725_v12, %v1784_v46  ;;  %v436_v12 = vmul.f32 %v1708_v5, %v1808_v52  ;;  %v550_v5 = vld [vmem:[%s2118_s7 + $0x30] sm:$0xff]  ;;  %v545_v0 = vld [vmem:[%s2118_s7 + $0x8] sm:$0xff] }
 0x1bb   :  { %567 = vmatpush.msrb.mxu2 %v550_v5  ;;  %v546_v62 = vld [vmem:[%s2118_s7 + $0x10] sm:$0xff] }
 0x1bc   :  { %v317_v6 = vmul.f32 1.442695, %v315_v3  ;;  %454 = vmatpush.msrb.mxu3 %v445_v1  ;;  %v544_v1 = vld [vmem:[%s2118_s7] sm:$0xff] }
 0x1bd   :  { %568 = vmatpush.msrb.mxu2 %v549_v60  ;;  %v1188_v60 = vld [vmem:[%s2117_s6] ss:$0 sm:$0xff] }
 0x1be   :  { %1192 = vpow2.f32 %v317_v6  ;;  %455 = vmatpush.msrb.mxu3 %v444_v4 }
 0x1bf   :  { %569 = vmatpush.msrb.mxu2 %v548_v51  ;;  %v593_v51 = vld [vmem:[%s2119_s8 + $0x20] sm:$0xff] }
 0x1c0   :  { %456 = vmatpush.msrb.mxu3 %v443_v57 }
 0x1c1   :  { %v314_v56 = vpop.xlane.xlu0 %313  ;;  %570 = vmatpush.msrb.mxu2 %v547_v10  ;;  %v585_v10 = vld [vmem:[%s2120_s9 + $0x20] sm:$0xff] }
 0x1c2   :  { %457 = vmatpush.msrb.mxu3 %v442_v55  ;;  %v316_v44 = vsub.f32 %v1716_v8, %v314_v56 }
 0x1c3   :  { %571 = vmatpush.msrb.mxu2 %v546_v62 }
 0x1c4   :  { %v1193_v58 = vpop.eup %1192  ;;  %v319_v20 = vmul.f32 1.442695, %v316_v44  ;;  %458 = vmatpush.msrb.mxu3 %v441_v49 }
 0x1c5   :  { %489 = vmatmul.f32.vlgmr.msra.gmra.mxu0 %v1193_v58  ;;  %572 = vmatpush.msrb.mxu2 %v545_v0 }
 0x1c6   :  { %1194 = vpow2.f32 %v319_v20  ;;  %459 = vmatpush.msrb.mxu3 %v440_v2  ;;  %v596_v2 = vld [vmem:[%s2119_s8 + $0x38] sm:$0xff] }
 0x1c7   :  { %573 = vmatpush.msrb.mxu2 %v544_v1  ;;  %v588_v20 = vld [vmem:[%s2120_s9 + $0x38] sm:$0xff] }
 0x1c8   :  { %460 = vmatpush.msrb.mxu3 %v439_v15  ;;  %v595_v15 = vld [vmem:[%s2119_s8 + $0x30] sm:$0xff]  ;;  %643 = vmatpush.msrb.mxu0 %v588_v20 }
 0x1c9   :  { %611 = vmatpush.msra.mxu2 %v596_v2  ;;  %v583_v2 = vld [vmem:[%s2120_s9 + $0x10] sm:$0xff] }
 0x1ca   :  { %461 = vmatpush.msrb.mxu3 %v438_v14 }
 0x1cb   :  { %612 = vmatpush.msra.mxu2 %v595_v15 }
 0x1cc   :  { %v1195_v8 = vpop.eup %1194  ;;  %462 = vmatpush.msrb.mxu3 %v437_v13 }
 0x1cd   :  { %492 = vmatmul.f32.gmra.mxu0 %v1195_v8 }
 0x1ce   :  { %463 = vmatpush.msrb.mxu3 %v436_v12 }
 0x1d0   :  { %464 = vmatpush.msrb.mxu3 %v435_v59  ;;  %v594_v59 = vld [vmem:[%s2119_s8 + $0x28] sm:$0xff] }
 0x1d1   :  { %613 = vmatpush.msra.mxu2 %v594_v59 }
 0x1d2   :  { %465 = vmatpush.msrb.mxu3 %v434_v11  ;;  %v586_v11 = vld [vmem:[%s2120_s9 + $0x28] sm:$0xff] }
 0x1d3   :  { %466 = vmatmul.f32.vlgmr.msrb.gmra.mxu3 %v1193_v58  ;;  %614 = vmatpush.msra.mxu2 %v593_v51 }
 0x1db   :  { %469 = vmatmul.f32.gmra.mxu3 %v1195_v8  ;;  %v587_v8 = vld [vmem:[%s2120_s9 + $0x30] sm:$0xff] }
 0x1dc   :  { %644 = vmatpush.msrb.mxu0 %v587_v8 }
 0x1de   :  { %645 = vmatpush.msrb.mxu0 %v586_v11 }
 0x1e0   :  { %646 = vmatpush.msrb.mxu0 %v585_v10 }
 0x242   :  { %v490_v61 = vpop.f32.mrf.mxu0 }
 0x243   :  { %1196 = vrcp.f32 %v490_v61  ;;  %v507_v49 = vand.u32 2147483648, %v490_v61  ;;  %vm501_vm9 = vweird.f32 %v490_v61  ;;  %v505_v58 = vand.u32 2147483647, %v490_v61 }
 0x245   :  { %v508_v5 = vor.u32 1.1754944e-38, %v507_v49  ;;  %vm506_vm11 = vcmp.eq.f32.partialorder %v505_v58, 8.507059e+37  ;;  %v591_v58 = vld [vmem:[%s2119_s8 + $0x10] sm:$0xff] }
 0x249   :  { %v1197_v3 = vpop.eup %1196 }
 0x24a   :  { %v497_v4 = vmul.f32 %v1197_v3, %v490_v61  ;;  %v493_v6 = vpop.f32.mrf.mxu0  ;;  %vm502_vm8 = vweird.f32 %v1197_v3 }
 0x24b   :  { %1198 = vrcp.f32 %v493_v6  ;;  %vm1881_vm10 = vmor %vm501_vm9, %vm502_vm8  ;;  %vm516_vm13 = vweird.f32 %v493_v6  ;;  %v520_v49 = vand.u32 2147483647, %v493_v6 }
 0x24c   :  { %v498_v57 = vsub.f32 1.0, %v497_v4  ;;  %v584_v4 = vld [vmem:[%s2120_s9 + $0x18] sm:$0xff] }
 0x24d   :  { %647 = vmatpush.msrb.mxu0 %v584_v4  ;;  %vm521_vm15 = vcmp.eq.f32.partialorder %v520_v49, 8.507059e+37 }
 0x24e   :  { %v499_v55 = vmul.f32 %v1197_v3, %v498_v57 }
 0x24f   :  { %648 = vmatpush.msrb.mxu0 %v583_v2 }
 0x250   :  { %v500_v56 = vadd.f32 %v1197_v3, %v499_v55  ;;  %v522_v55 = vand.u32 2147483648, %v493_v6 }
 0x251   :  { %v1199_v44 = vpop.eup %1198 }
 0x252   :  { %v512_v14 = vmul.f32 %v1199_v44, %v493_v6  ;;  %v504_v12 = vsel %vm1881_vm10, %v1197_v3, %v500_v56  ;;  %vm517_vm12 = vweird.f32 %v1199_v44  ;;  %v592_v3 = vld [vmem:[%s2119_s8 + $0x18] sm:$0xff]  ;;  %v582_v6 = vld [vmem:[%s2120_s9 + $0x8] sm:$0xff]  ;;  %v523_v13 = vor.u32 1.1754944e-38, %v522_v55 }
 0x253   :  { %v509_v62 = vsel %vm506_vm11, %v508_v5, %v504_v12  ;;  %vm518_vm14 = vmor %vm516_vm13, %vm517_vm12  ;;  %615 = vmatpush.msra.mxu2 %v592_v3  ;;  %649 = vmatpush.msrb.mxu0 %v582_v6  ;;  %v589_v3 = vld [vmem:[%s2119_s8] sm:$0xff] }
 0x254   :  { %v513_v9 = vsub.f32 1.0, %v512_v14  ;;  %v590_v14 = vld [vmem:[%s2119_s8 + $0x8] sm:$0xff] }
 0x255   :  { %616 = vmatpush.msra.mxu2 %v591_v58 }
 0x256   :  { %v467_v61 = vpop.f32.mrf.mxu3  ;;  %v514_v0 = vmul.f32 %v1199_v44, %v513_v9 }
 0x257   :  { %v510_v1 = vmul.f32 %v509_v62, %v467_v61  ;;  %617 = vmatpush.msra.mxu2 %v590_v14 }
 0x258   :  { %v515_v57 = vadd.f32 %v1199_v44, %v514_v0 }
 0x259   :  { %v530_v56 = vadd.f32 %v1188_v60, %v510_v1  ;;  %618 = vmatpush.msra.mxu2 %v589_v3 }
 0x25a   :  { %v519_v15 = vsel %vm518_vm14, %v1199_v44, %v515_v57 }
 0x25b   :  { %v534_v20 = vmin.f32 %v530_v56, 0.0  ;;  %v524_v59 = vsel %vm521_vm15, %v523_v13, %v519_v15  ;;  %vm532_vm2 = vcmp.gt.f32.partialorder %v530_v56, 0.0 }
 0x25d   :  { %v536_v8 = vmul.f32 1.442695, %v534_v20 }
 0x25e   :  { %v470_v12 = vpop.f32.mrf.mxu3 }
 0x25f   :  { %1200 = vpow2.f32 %v536_v8  ;;  %v525_v11 = vmul.f32 %v524_v59, %v470_v12 }
 0x261   :  { %v531_v44 = vadd.f32 %v1188_v60, %v525_v11  ;;  %v581_v60 = vld [vmem:[%s2120_s9] sm:$0xff] }
 0x262   :  { %650 = vmatpush.msrb.mxu0 %v581_v60 }
 0x263   :  { %v535_v9 = vmin.f32 %v531_v44, 0.0  ;;  %vm533_vm3 = vcmp.gt.f32.partialorder %v531_v44, 0.0 }
 0x264   :  { %780 = vmatpush.msra.mxu0 %v1730_v16 }
 0x265   :  { %v1201_v5 = vpop.eup %1200  ;;  %v538_v51 = vmul.f32 1.442695, %v535_v9 }
 0x266   :  { %v1129_v10 = vadd.f32 -1.0, %v1201_v5  ;;  %781 = vmatpush.msra.mxu0 %v1735_v17 }
 0x267   :  { %1202 = vpow2.f32 %v538_v51 }
 0x268   :  { %v542_v61 = vsel %vm532_vm2, %v530_v56, %v1129_v10  ;;  %782 = vmatpush.msra.mxu0 %v1742_v18 }
 0x269   :  { %1131 = vmatmul.msk.f32.vlgmr.msrb.gmra.mxu2 %vm235_vm1, %v542_v61 }
 0x26a   :  { %783 = vmatpush.msra.mxu0 %v1748_v19 }
 0x26c   :  { %784 = vmatpush.msra.mxu0 %v1754_v21 }
 0x26d   :  { %v1203_v62 = vpop.eup %1202 }
 0x26e   :  { %v1130_v0 = vadd.f32 -1.0, %v1203_v62  ;;  %785 = vmatpush.msra.mxu0 %v1760_v38 }
 0x270   :  { %v543_v1 = vsel %vm533_vm3, %v531_v44, %v1130_v0  ;;  %786 = vmatpush.msra.mxu0 %v1766_v42 }
 0x271   :  { %1132 = vmatmul.msk.f32.gmra.mxu2 %vm235_vm1, %v543_v1 }
 0x272   :  { %787 = vmatpush.msra.mxu0 %v1772_v43 }
 0x274   :  { %788 = vmatpush.msra.mxu0 %v1778_v45 }
 0x276   :  { %789 = vmatpush.msra.mxu0 %v1784_v46 }
 0x278   :  { %790 = vmatpush.msra.mxu0 %v1790_v47 }
 0x27a   :  { %791 = vmatpush.msra.mxu0 %v1796_v48 }
 0x27c   :  { %792 = vmatpush.msra.mxu0 %v1802_v50 }
 0x27e   :  { %793 = vmatpush.msra.mxu0 %v1808_v52 }
 0x280   :  { %794 = vmatpush.msra.mxu0 %v1814_v53 }
 0x282   :  { %795 = vmatpush.msra.mxu0 %v1820_v54 }
 0x2ec   :  { %v575_v4 = vpop.f32.mrf.mxu2 }
 0x2ed   :  { %1133 = vmatmul.msk.f32.vlgmr.msra.gmra.mxu2 %vm235_vm1, %v575_v4  ;;  %1135 = vmatmul.msk.f32.vlgmr.msrb.gmra.mxu0 %vm235_vm1, %v575_v4 }
 0x2f4   :  { %v578_v57 = vpop.f32.mrf.mxu2 }
 0x2f5   :  { %1134 = vmatmul.msk.f32.gmra.mxu2 %vm235_vm1, %v578_v57  ;;  %1136 = vmatmul.msk.f32.gmra.mxu0 %vm235_vm1, %v578_v57 }
 0x2f6   :  { %690 = vmatpush.msra.mxu1 %v578_v57 }
 0x2f8   :  { %691 = vmatpush.msra.mxu1 %v575_v4 }
 0x2f9   :  { %1137 = vmatmul.msk.f32.vlgmr.msra.gmra.mxu1 %vm189_vm0, %v1576_v22 }
 0x301   :  { %1138 = vmatmul.msk.f32.gmra.mxu1 %vm189_vm0, %v1583_v23 }
 0x309   :  { %1139 = vmatmul.msk.f32.gmra.mxu1 %vm189_vm0, %v1590_v24 }
 0x311   :  { %1140 = vmatmul.msk.f32.gmra.mxu1 %vm189_vm0, %v1597_v25 }
 0x319   :  { %1141 = vmatmul.msk.f32.gmra.mxu1 %vm189_vm0, %v1604_v26 }
 0x321   :  { %1142 = vmatmul.msk.f32.gmra.mxu1 %vm189_vm0, %v1611_v27 }
 0x329   :  { %1143 = vmatmul.msk.f32.gmra.mxu1 %vm189_vm0, %v1618_v28 }
 0x331   :  { %1144 = vmatmul.msk.f32.gmra.mxu1 %vm189_vm0, %v1625_v29 }
 0x339   :  { %1145 = vmatmul.msk.f32.gmra.mxu1 %vm189_vm0, %v1632_v30 }
 0x341   :  { %1146 = vmatmul.msk.f32.gmra.mxu1 %vm189_vm0, %v1639_v31 }
 0x349   :  { %1147 = vmatmul.msk.f32.gmra.mxu1 %vm189_vm0, %v1646_v32 }
 0x351   :  { %1148 = vmatmul.msk.f32.gmra.mxu1 %vm189_vm0, %v1653_v33 }
 0x359   :  { %1149 = vmatmul.msk.f32.gmra.mxu1 %vm189_vm0, %v1660_v34 }
 0x361   :  { %1150 = vmatmul.msk.f32.gmra.mxu1 %vm189_vm0, %v1667_v35 }
 0x369   :  { %1151 = vmatmul.msk.f32.gmra.mxu1 %vm189_vm0, %v1676_v37 }
 0x36a   :  { %v652_v31 = vpop.f32.mrf.mxu0 }
 0x370   :  { %v620_v22 = vpop.f32.mrf.mxu2 }
 0x371   :  { %1152 = vmatmul.msk.f32.gmra.mxu1 %vm189_vm0, %v1683_v39  ;;  %v626_v25 = vmul.f32 %v620_v22, %v1685_v40 }
 0x372   :  { %v655_v39 = vpop.f32.mrf.mxu0 }
 0x376   :  { %v1983_v23 = vpop.f32.mrf.mxu1 }
 0x377   :  { %v741_v22 = vmul.f32 %v1983_v23, %v1820_v54  ;;  %v856_v54 = vld [vmem:[%s2122_s11 + $0x28] sm:$0xff]  ;;  %v855_v23 = vld [vmem:[%s2122_s11 + $0x20] sm:$0xff] }
 0x378   :  { %v623_v24 = vpop.f32.mrf.mxu2 }
 0x379   :  { %v627_v26 = vmul.f32 %v623_v24, %v1687_v41  ;;  %v854_v24 = vld [vmem:[%s2122_s11 + $0x18] sm:$0xff] }
 0x37b   :  { %v628_v27 = vadd.f32 %v627_v26, %v626_v25  ;;  %v853_v25 = vld [vmem:[%s2122_s11 + $0x10] sm:$0xff] }
 0x37d   :  { %v629_v28 = vrot.slane %v628_v27, 4 }
 0x37e   :  { %v1987_v29 = vpop.f32.mrf.mxu1 }
 0x37f   :  { %v630_v30 = vadd.f32 %v629_v28, %v628_v27  ;;  %v852_v27 = vld [vmem:[%s2122_s11 + $0x8] sm:$0xff]  ;;  %v851_v28 = vld [vmem:[%s2122_s11] sm:$0xff] }
 0x381   :  { %v631_v32 = vrot.slane %v630_v30, 2 }
 0x383   :  { %v632_v33 = vadd.f32 %v631_v32, %v630_v30 }
 0x385   :  { %v633_v34 = vrot.slane %v632_v33, 1 }
 0x386   :  { %v699_v35 = vpop.f32.mrf.mxu1 }
 0x387   :  { %v634_v37 = vadd.f32 %v633_v34, %v632_v33 }
 0x389   :  { %v653_v55 = vadd.f32 %v652_v31, %v634_v37  ;;  %v656_v49 = vadd.f32 %v655_v39, %v634_v37  ;;  %v903_v37 = vld [vmem:[%s2124_s13 + $0x78] sm:$0xff] }
 0x38a   :  { %904 = vmatpush.msrb.mxu0 %v903_v37  ;;  %1159 = vmatpush.msrb.mxu1 %v903_v37 }
 0x38b   :  { %vm658_vm4 = vcmp.gt.f32.partialorder %v653_v55, 0.0  ;;  %v660_v56 = vmul.f32 0.2, %v653_v55  ;;  %v661_v2 = vmul.f32 0.2, %v656_v49  ;;  %vm659_vm6 = vcmp.gt.f32.partialorder %v656_v49, 0.0 }
 0x38d   :  { %v662_v58 = vsel %vm658_vm4, %v653_v55, %v660_v56  ;;  %v663_v20 = vsel %vm659_vm6, %v656_v49, %v661_v2  ;;  %v902_v55 = vld [vmem:[%s2124_s13 + $0x70] sm:$0xff]  ;;  %v901_v56 = vld [vmem:[%s2124_s13 + $0x68] sm:$0xff]  ;;  %v1189_v2 = vld [vmem:[%s2121_s10] ss:$0 sm:$0xff]  ;;  %s2149_s10 = sld [smem:[#allocation21_spill]] }
 0x38e   :  { %v702_v40 = vpop.f32.mrf.mxu1  ;;  %v664_v41 = vsel %vm1698_vm5, %v662_v58, -1e+30  ;;  %v665_v14 = vsel %vm1710_vm7, %v663_v20, -1e+30  ;;  %905 = vmatpush.msrb.mxu0 %v902_v55  ;;  %1160 = vmatpush.msrb.mxu1 %v902_v55 }
 0x38f   :  { %666 = vmax.xlane.f32.xlu1 %v664_v41 }
 0x390   :  { %906 = vmatpush.msrb.mxu0 %v901_v56  ;;  %1161 = vmatpush.msrb.mxu1 %v901_v56 }
 0x396   :  { %v705_v15 = vpop.f32.mrf.mxu1 }
 0x397   :  { %668 = vmax.xlane.f32.xlu1 %v665_v14 }
 0x39e   :  { %v708_v6 = vpop.f32.mrf.mxu1 }
 0x39f   :  { %v746_v60 = vmul.f32 %v708_v6, %v1790_v47 }
 0x3a6   :  { %v711_v13 = vpop.f32.mrf.mxu1 }
 0x3ae   :  { %v714_v8 = vpop.f32.mrf.mxu1 }
 0x3b6   :  { %v717_v12 = vpop.f32.mrf.mxu1 }
 0x3be   :  { %v720_v59 = vpop.f32.mrf.mxu1 }
 0x3bf   :  { %v750_v3 = vmul.f32 %v720_v59, %v1766_v42  ;;  %v744_v42 = vmul.f32 %v702_v40, %v1802_v50 }
 0x3c6   :  { %v723_v11 = vpop.f32.mrf.mxu1 }
 0x3c7   :  { %v751_v1 = vmul.f32 %v723_v11, %v1760_v38  ;;  %v745_v38 = vmul.f32 %v705_v15, %v1796_v48  ;;  %v900_v15 = vld [vmem:[%s2124_s13 + $0x60] sm:$0xff] }
 0x3c8   :  { %907 = vmatpush.msrb.mxu0 %v900_v15  ;;  %1162 = vmatpush.msrb.mxu1 %v900_v15 }
 0x3ce   :  { %v726_v44 = vpop.f32.mrf.mxu1 }
 0x3cf   :  { %v752_v0 = vmul.f32 %v726_v44, %v1754_v21 }
 0x3d6   :  { %v729_v9 = vpop.f32.mrf.mxu1 }
 0x3d7   :  { %v753_v62 = vmul.f32 %v729_v9, %v1748_v19  ;;  %v898_v9 = vld [vmem:[%s2124_s13 + $0x50] sm:$0xff] }
 0x3de   :  { %v732_v5 = vpop.f32.mrf.mxu1 }
 0x3df   :  { %v754_v7 = vmul.f32 %v732_v5, %v1742_v18  ;;  %v747_v18 = vmul.f32 %v711_v13, %v1784_v46  ;;  %v742_v46 = vmul.f32 %v1987_v29, %v1814_v53  ;;  %v857_v53 = vld [vmem:[%s2122_s11 + $0x30] sm:$0xff] }
 0x3e6   :  { %v735_v63 = vpop.f32.mrf.mxu1 }
 0x3e7   :  { %v755_v10 = vmul.f32 %v735_v63, %v1735_v17  ;;  %v749_v17 = vmul.f32 %v717_v12, %v1772_v43  ;;  %v743_v43 = vmul.f32 %v699_v35, %v1808_v52  ;;  %v858_v52 = vld [vmem:[%s2122_s11 + $0x38] sm:$0xff] }
 0x3ee   :  { %v738_v51 = vpop.f32.mrf.mxu1 }
 0x3ef   :  { %v756_v61 = vmul.f32 %v738_v51, %v1730_v16  ;;  %v748_v16 = vmul.f32 %v714_v8, %v1778_v45  ;;  %v899_v8 = vld [vmem:[%s2124_s13 + $0x58] sm:$0xff]  ;;  %v897_v51 = vld [vmem:[%s2124_s13 + $0x48] sm:$0xff] }
 0x3f0   :  { %908 = vmatpush.msrb.mxu0 %v899_v8  ;;  %1163 = vmatpush.msrb.mxu1 %v899_v8 }
 0x3f1   :  { %757 = vmatpush.msrb.mxu2 %v756_v61 }
 0x3f2   :  { %909 = vmatpush.msrb.mxu0 %v898_v9  ;;  %1164 = vmatpush.msrb.mxu1 %v898_v9 }
 0x3f3   :  { %758 = vmatpush.msrb.mxu2 %v755_v10 }
 0x3f4   :  { %910 = vmatpush.msrb.mxu0 %v897_v51  ;;  %1165 = vmatpush.msrb.mxu1 %v897_v51 }
 0x3f5   :  { %759 = vmatpush.msrb.mxu2 %v754_v7 }
 0x3f7   :  { %760 = vmatpush.msrb.mxu2 %v753_v62  ;;  %v896_v62 = vld [vmem:[%s2124_s13 + $0x40] sm:$0xff] }
 0x3f8   :  { %911 = vmatpush.msrb.mxu0 %v896_v62  ;;  %1166 = vmatpush.msrb.mxu1 %v896_v62 }
 0x3f9   :  { %761 = vmatpush.msrb.mxu2 %v752_v0 }
 0x3fb   :  { %762 = vmatpush.msrb.mxu2 %v751_v1 }
 0x3fd   :  { %763 = vmatpush.msrb.mxu2 %v750_v3 }
 0x3ff   :  { %764 = vmatpush.msrb.mxu2 %v749_v17  ;;  %v895_v17 = vld [vmem:[%s2124_s13 + $0x38] sm:$0xff] }
 0x400   :  { %912 = vmatpush.msrb.mxu0 %v895_v17  ;;  %1167 = vmatpush.msrb.mxu1 %v895_v17 }
 0x401   :  { %765 = vmatpush.msrb.mxu2 %v748_v16 }
 0x402   :  { %v667_v19 = vpop.xlane.xlu1 %666 }
 0x403   :  { %766 = vmatpush.msrb.mxu2 %v747_v18  ;;  %v670_v21 = vsub.f32 %v664_v41, %v667_v19  ;;  %v894_v18 = vld [vmem:[%s2124_s13 + $0x30] sm:$0xff] }
 0x404   :  { %913 = vmatpush.msrb.mxu0 %v894_v18  ;;  %1168 = vmatpush.msrb.mxu1 %v894_v18  ;;  %v1190_v18 = vld [vmem:[%s2148_s14] ss:$0 sm:$0xff] }
 0x405   :  { %v672_v4 = vmul.f32 1.442695, %v670_v21  ;;  %767 = vmatpush.msrb.mxu2 %v746_v60  ;;  %v893_v60 = vld [vmem:[%s2124_s13 + $0x28] sm:$0xff] }
 0x406   :  { %914 = vmatpush.msrb.mxu0 %v893_v60  ;;  %1169 = vmatpush.msrb.mxu1 %v893_v60 }
 0x407   :  { %1204 = vpow2.f32 %v672_v4  ;;  %768 = vmatpush.msrb.mxu2 %v745_v38  ;;  %v892_v4 = vld [vmem:[%s2124_s13 + $0x20] sm:$0xff] }
 0x408   :  { %915 = vmatpush.msrb.mxu0 %v892_v4  ;;  %1170 = vmatpush.msrb.mxu1 %v892_v4 }
 0x409   :  { %769 = vmatpush.msrb.mxu2 %v744_v42 }
 0x40a   :  { %v669_v45 = vpop.xlane.xlu1 %668 }
 0x40b   :  { %770 = vmatpush.msrb.mxu2 %v743_v43  ;;  %v671_v57 = vsub.f32 %v665_v14, %v669_v45  ;;  %v891_v43 = vld [vmem:[%s2124_s13 + $0x18] sm:$0xff] }
 0x40c   :  { %916 = vmatpush.msrb.mxu0 %v891_v43  ;;  %1171 = vmatpush.msrb.mxu1 %v891_v43 }
 0x40d   :  { %v1205_v47 = vpop.eup %1204  ;;  %v674_v48 = vmul.f32 1.442695, %v671_v57  ;;  %771 = vmatpush.msrb.mxu2 %v742_v46  ;;  %v890_v46 = vld [vmem:[%s2124_s13 + $0x10] sm:$0xff]  ;;  %v889_v57 = vld [vmem:[%s2124_s13 + $0x8] sm:$0xff] }
 0x40e   :  { %796 = vmatmul.f32.vlgmr.msra.gmra.mxu0 %v1205_v47  ;;  %1172 = vmatpush.msrb.mxu1 %v890_v46 }
 0x40f   :  { %1206 = vpow2.f32 %v674_v48  ;;  %772 = vmatpush.msrb.mxu2 %v741_v22  ;;  %917 = vmatpush.msrb.mxu0 %v890_v46 }
 0x410   :  { %773 = vmatmul.f32.vlgmr.msrb.gmra.mxu2 %v1205_v47  ;;  %1173 = vmatpush.msrb.mxu1 %v889_v57 }
 0x411   :  { %873 = vmatpush.msra.mxu2 %v858_v52  ;;  %918 = vmatpush.msrb.mxu0 %v889_v57 }
 0x413   :  { %874 = vmatpush.msra.mxu2 %v857_v53 }
 0x415   :  { %v1207_v50 = vpop.eup %1206  ;;  %875 = vmatpush.msra.mxu2 %v856_v54  ;;  %v927_v54 = vld [vmem:[%s2123_s12] sm:$0x1] }
 0x416   :  { %799 = vmatmul.f32.gmra.mxu0 %v1207_v50 }
 0x417   :  { %876 = vmatpush.msra.mxu2 %v855_v23 }
 0x418   :  { %776 = vmatmul.f32.gmra.mxu2 %v1207_v50  ;;  %v888_v50 = vld [vmem:[%s2124_s13] sm:$0xff] }
 0x419   :  { %877 = vmatpush.msra.mxu2 %v854_v24  ;;  %919 = vmatpush.msrb.mxu0 %v888_v50 }
 0x41a   :  { %1174 = vmatpush.msrb.mxu1 %v888_v50 }
 0x41b   :  { %878 = vmatpush.msra.mxu2 %v853_v25  ;;  %v145_v25 = vld [vmem:[#allocation5] sm:$0x3] }
 0x41d   :  { %879 = vmatpush.msra.mxu2 %v852_v27 }
 0x41f   :  { %880 = vmatpush.msra.mxu2 %v851_v28 }
 0x48b   :  { %v797_v26 = vpop.f32.mrf.mxu0 }
 0x48c   :  { %1208 = vrcp.f32 %v797_v26  ;;  %v814_v33 = vand.u32 2147483648, %v797_v26  ;;  %v812_v35 = vand.u32 2147483647, %v797_v26  ;;  %vm808_vm7 = vweird.f32 %v797_v26 }
 0x48e   :  { %v815_v40 = vor.u32 1.1754944e-38, %v814_v33  ;;  %vm813_vm9 = vcmp.eq.f32.partialorder %v812_v35, 8.507059e+37 }
 0x492   :  { %v1209_v29 = vpop.eup %1208 }
 0x493   :  { %v804_v30 = vmul.f32 %v1209_v29, %v797_v26  ;;  %v800_v31 = vpop.f32.mrf.mxu0  ;;  %vm809_vm5 = vweird.f32 %v1209_v29  ;;  %v774_v58 = vpop.f32.mrf.mxu2 }
 0x494   :  { %1210 = vrcp.f32 %v800_v31  ;;  %vm810_vm8 = vmor %vm808_vm7, %vm809_vm5  ;;  %v829_v12 = vand.u32 2147483648, %v800_v31  ;;  %v827_v44 = vand.u32 2147483647, %v800_v31  ;;  %vm823_vm11 = vweird.f32 %v800_v31 }
 0x495   :  { %v805_v32 = vsub.f32 1.0, %v804_v30 }
 0x496   :  { %v830_v10 = vor.u32 1.1754944e-38, %v829_v12  ;;  %vm828_vm13 = vcmp.eq.f32.partialorder %v827_v44, 8.507059e+37 }
 0x497   :  { %v806_v34 = vmul.f32 %v1209_v29, %v805_v32 }
 0x499   :  { %v807_v39 = vadd.f32 %v1209_v29, %v806_v34 }
 0x49a   :  { %v1211_v49 = vpop.eup %1210 }
 0x49b   :  { %v811_v41 = vsel %vm810_vm8, %v1209_v29, %v807_v39  ;;  %v819_v20 = vmul.f32 %v1211_v49, %v800_v31  ;;  %vm824_vm10 = vweird.f32 %v1211_v49  ;;  %v777_v0 = vpop.f32.mrf.mxu2  ;;  %v146_v29 = vld [vmem:[#allocation5 + $0x2] sm:$0x3] }
 0x49c   :  { %v816_v14 = vsel %vm813_vm9, %v815_v40, %v811_v41  ;;  %vm825_vm12 = vmor %vm823_vm11, %vm824_vm10  ;;  %vm148_vm2 = vnez %v146_v29 }
 0x49d   :  { %v817_v6 = vmul.f32 %v816_v14, %v774_v58  ;;  %v820_v13 = vsub.f32 1.0, %v819_v20  ;;  %v968_v34 = vsel %vm148_vm2, 16843009, %v1393_v36 }
 0x49e   :  { %v970_v39 = vunpack.c.0.s8 %v968_v34 }
 0x49f   :  { %v837_v59 = vadd.f32 %v1189_v2, %v817_v6  ;;  %v821_v11 = vmul.f32 %v1211_v49, %v820_v13 }
 0x4a0   :  { %vm972_vm5 = vcmp.ne.s32.totalorder %v970_v39, 0 }
 0x4a1   :  { %v841_v5 = vmin.f32 %v837_v59, 0.0  ;;  %v822_v63 = vadd.f32 %v1211_v49, %v821_v11  ;;  %vm839_vm14 = vcmp.gt.f32.partialorder %v837_v59, 0.0 }
 0x4a3   :  { %v843_v61 = vmul.f32 1.442695, %v841_v5  ;;  %v826_v7 = vsel %vm825_vm12, %v1211_v49, %v822_v63 }
 0x4a4   :  { %v831_v1 = vsel %vm828_vm13, %v830_v10, %v826_v7 }
 0x4a5   :  { %1212 = vpow2.f32 %v843_v61  ;;  %v832_v3 = vmul.f32 %v831_v1, %v777_v0 }
 0x4a7   :  { %v838_v16 = vadd.f32 %v1189_v2, %v832_v3 }
 0x4a9   :  { %v842_v19 = vmin.f32 %v838_v16, 0.0  ;;  %vm840_vm15 = vcmp.gt.f32.partialorder %v838_v16, 0.0 }
 0x4ab   :  { %v1213_v21 = vpop.eup %1212  ;;  %v845_v38 = vmul.f32 1.442695, %v842_v19 }
 0x4ac   :  { %v1153_v42 = vadd.f32 -1.0, %v1213_v21 }
 0x4ad   :  { %1214 = vpow2.f32 %v845_v38  ;;  %v1191_v38 = vld [vmem:[%s2149_s10] ss:$0 sm:$0xff] }
 0x4ae   :  { %v849_v45 = vsel %vm839_vm14, %v837_v59, %v1153_v42 }
 0x4af   :  { %1155 = vmatmul.msk.f32.vlgmr.msra.gmra.mxu2 %vm235_vm1, %v849_v45 }
 0x4b3   :  { %v1215_v47 = vpop.eup %1214 }
 0x4b4   :  { %v1154_v22 = vadd.f32 -1.0, %v1215_v47 }
 0x4b6   :  { %v850_v48 = vsel %vm840_vm15, %v838_v16, %v1154_v22 }
 0x4b7   :  { %1156 = vmatmul.msk.f32.gmra.mxu2 %vm235_vm1, %v850_v48  ;;  %vm147_vm1 = vnez %v145_v25 }
 0x4b8   :  { %v967_v27 = vsel %vm147_vm1, 16843009, %v1393_v36 }
 0x4b9   :  { %v969_v30 = vunpack.c.0.s8 %v967_v27 }
 0x4bb   :  { %vm971_vm4 = vcmp.ne.s32.totalorder %v969_v30, 0 }
 0x532   :  { %v882_v52 = vpop.f32.mrf.mxu2 }
 0x533   :  { %920 = vmatmul.f32.vlgmr.msrb.gmra.mxu0 %v882_v52 }
 0x53a   :  { %v885_v53 = vpop.f32.mrf.mxu2 }
 0x53b   :  { %923 = vmatmul.f32.vlgmr.msrb.gmra.mxu1 %v885_v53  ;;  %942 = vmatpush.xpose.msrb.mxu2 %v885_v53 }
 0x53f   :  { %943 = vmatpush.xpose.msrb.mxu2 %v882_v52 }
 0x542   :  { %944 = vmatmul.f32.vlgmr.msrb.gmra.mxu2 %v927_v54 }
 0x543   :  { %1013 = vmatpush.msra.mxu2 %v885_v53 }
 0x545   :  { %1014 = vmatpush.msra.mxu2 %v882_v52 }
 0x5b0   :  { %v921_v23 = vpop.f32.mrf.mxu0 }
 0x5b1   :  { %950 = vperm.xlu2 %1186, %v921_v23  }
 0x5b8   :  { %v924_v24 = vpop.f32.mrf.mxu1 }
 0x5b9   :  { %955 = vperm.xlu2 %1186, %v924_v24  }
 0x5c5   :  { %v945_v26 = vpop.f32.mrf.mxu2 }
 0x5c6   :  { %v958_v28 = vperm.slane %v945_v26, 0 }
 0x60b   :  { %v951_v31 = vpop.permute.xlu2 %950 }
 0x60c   :  { %v959_v32 = vadd.f32 %v958_v28, %v951_v31 }
 0x60e   :  { %v963_v33 = vmul.f32 0.2, %v959_v32  ;;  %vm961_vm3 = vcmp.gt.f32.partialorder %v959_v32, 0.0 }
 0x610   :  { %v965_v35 = vsel %vm961_vm3, %v959_v32, %v963_v33 }
 0x611   :  { %v973_v37 = vsel %vm971_vm4, %v965_v35, -1e+30 }
 0x612   :  { %v975_v55 = vsel %vm189_vm0, %v973_v37, -inf }
 0x613   :  { %976 = vmax.xlane.f32.xlu0 %v975_v55  ;;  %v956_v56 = vpop.permute.xlu2 %955 }
 0x614   :  { %v960_v49 = vadd.f32 %v958_v28, %v956_v56 }
 0x616   :  { %v964_v58 = vmul.f32 0.2, %v960_v49  ;;  %vm962_vm6 = vcmp.gt.f32.partialorder %v960_v49, 0.0 }
 0x618   :  { %v966_v40 = vsel %vm962_vm6, %v960_v49, %v964_v58 }
 0x619   :  { %v974_v41 = vsel %vm972_vm5, %v966_v40, -1e+30 }
 0x61a   :  { %v978_v2 = vsel %vm189_vm0, %v974_v41, -inf }
 0x61b   :  { %979 = vmax.xlane.f32.xlu1 %v978_v2 }
 0x686   :  { %v977_v20 = vpop.xlane.xlu0 %976 }
 0x687   :  { %v981_v15 = vsub.f32 %v973_v37, %v977_v20 }
 0x689   :  { %v983_v14 = vmul.f32 1.442695, %v981_v15 }
 0x68b   :  { %1216 = vpow2.f32 %v983_v14 }
 0x68e   :  { %v980_v36 = vpop.xlane.xlu1 %979 }
 0x68f   :  { %v982_v6 = vsub.f32 %v974_v41, %v980_v36 }
 0x691   :  { %v1217_v13 = vpop.eup %1216  ;;  %v985_v8 = vmul.f32 1.442695, %v982_v6 }
 0x692   :  { %1157 = vmatmul.msk.f32.vlgmr.msra.gmra.mxu2 %vm189_vm0, %v1217_v13  ;;  %v987_v12 = vsel %vm189_vm0, %v1217_v13, 0.0 }
 0x693   :  { %1218 = vpow2.f32 %v985_v8  ;;  %988 = vadd.xlane.f32.xlu2 %v987_v12 }
 0x699   :  { %v1219_v59 = vpop.eup %1218 }
 0x69a   :  { %1158 = vmatmul.msk.f32.gmra.mxu2 %vm189_vm0, %v1219_v59  ;;  %v990_v11 = vsel %vm189_vm0, %v1219_v59, 0.0 }
 0x69b   :  { %991 = vadd.xlane.f32.xlu0 %v990_v11 }
 0x706   :  { %v989_v44 = vpop.xlane.xlu2 %988 }
 0x707   :  { %1220 = vrcp.f32 %v989_v44  ;;  %v1033_v10 = vand.u32 2147483648, %v989_v44  ;;  %v1031_v7 = vand.u32 2147483647, %v989_v44  ;;  %vm1027_vm8 = vweird.f32 %v989_v44 }
 0x709   :  { %v1034_v3 = vor.u32 1.1754944e-38, %v1033_v10  ;;  %vm1032_vm0 = vcmp.eq.f32.partialorder %v1031_v7, 8.507059e+37 }
 0x70d   :  { %v1221_v9 = vpop.eup %1220 }
 0x70e   :  { %v1023_v5 = vmul.f32 %v1221_v9, %v989_v44  ;;  %v992_v63 = vpop.xlane.xlu0 %991  ;;  %vm1028_vm7 = vweird.f32 %v1221_v9 }
 0x70f   :  { %1222 = vrcp.f32 %v992_v63  ;;  %vm1029_vm9 = vmor %vm1027_vm8, %vm1028_vm7  ;;  %v1048_v4 = vand.u32 2147483648, %v992_v63  ;;  %v1046_v45 = vand.u32 2147483647, %v992_v63  ;;  %vm1042_vm11 = vweird.f32 %v992_v63 }
 0x710   :  { %v1024_v51 = vsub.f32 1.0, %v1023_v5 }
 0x711   :  { %v1049_v47 = vor.u32 1.1754944e-38, %v1048_v4  ;;  %vm1047_vm13 = vcmp.eq.f32.partialorder %v1046_v45, 8.507059e+37 }
 0x712   :  { %v1025_v61 = vmul.f32 %v1221_v9, %v1024_v51 }
 0x714   :  { %v1026_v62 = vadd.f32 %v1221_v9, %v1025_v61 }
 0x715   :  { %v1223_v0 = vpop.eup %1222  ;;  %v1016_v1 = vpop.f32.mrf.mxu2 }
 0x716   :  { %v1038_v17 = vmul.f32 %v1223_v0, %v992_v63  ;;  %v1030_v16 = vsel %vm1029_vm9, %v1221_v9, %v1026_v62  ;;  %vm1043_vm10 = vweird.f32 %v1223_v0 }
 0x717   :  { %v1035_v19 = vsel %vm1032_vm0, %v1034_v3, %v1030_v16  ;;  %vm1044_vm12 = vmor %vm1042_vm11, %vm1043_vm10 }
 0x718   :  { %v1039_v60 = vsub.f32 1.0, %v1038_v17  ;;  %v1036_v21 = vmul.f32 %v1035_v19, %v1016_v1 }
 0x71a   :  { %v1056_v42 = vadd.f32 %v1190_v18, %v1036_v21  ;;  %v1040_v43 = vmul.f32 %v1223_v0, %v1039_v60 }
 0x71c   :  { %v1041_v46 = vadd.f32 %v1223_v0, %v1040_v43  ;;  %v1062_v57 = vadd.f32 %v1191_v38, %v1056_v42 }
 0x71d   :  { %v1019_v48 = vpop.f32.mrf.mxu2 }
 0x71e   :  { %v1045_v22 = vsel %vm1044_vm12, %v1223_v0, %v1041_v46  ;;  %1064 = vmax.xlane.f32.xlu1 %v1062_v57 }
 0x71f   :  { %v1050_v50 = vsel %vm1047_vm13, %v1049_v47, %v1045_v22 }
 0x720   :  { %v1051_v52 = vmul.f32 %v1050_v50, %v1019_v48 }
 0x722   :  { %v1057_v53 = vadd.f32 %v1190_v18, %v1051_v52 }
 0x724   :  { %v1063_v54 = vadd.f32 %v1191_v38, %v1057_v53 }
 0x726   :  { %1066 = vmax.xlane.f32.xlu0 %v1063_v54 }
 0x791   :  { %v1065_v23 = vpop.xlane.xlu1 %1064 }
 0x792   :  { %v1068_v24 = vsub.f32 %v1062_v57, %v1065_v23 }
 0x794   :  { %v1070_v25 = vmul.f32 1.442695, %v1068_v24 }
 0x796   :  { %1224 = vpow2.f32 %v1070_v25 }
 0x799   :  { %v1067_v26 = vpop.xlane.xlu0 %1066 }
 0x79a   :  { %v1069_v27 = vsub.f32 %v1063_v54, %v1067_v26 }
 0x79c   :  { %v1225_v28 = vpop.eup %1224  ;;  %v1072_v29 = vmul.f32 1.442695, %v1069_v27 }
 0x79d   :  { %1074 = vadd.xlane.f32.xlu1 %v1225_v28 }
 0x79e   :  { %1226 = vpow2.f32 %v1072_v29 }
 0x7a4   :  { %v1227_v30 = vpop.eup %1226 }
 0x7a5   :  { %1076 = vadd.xlane.f32.xlu0 %v1227_v30 }
 0x810   :  { %v1075_v31 = vpop.xlane.xlu1 %1074 }
 0x811   :  { %1228 = vlog2.f32 %v1075_v31 }
 0x817   :  { %v1229_v32 = vpop.eup %1228 }
 0x818   :  { %v1079_v33 = vmul.f32 0.6931472, %v1229_v32  ;;  %v1077_v34 = vpop.xlane.xlu0 %1076 }
 0x819   :  { %1230 = vlog2.f32 %v1077_v34 }
 0x81a   :  { %v1082_v35 = vsub.f32 %v1068_v24, %v1079_v33 }
 0x81c   :  { %1084 = vst [vmem:[#allocation11] sm:$0xff] %v1082_v35 }
 0x81f   :  { %v1231_v37 = vpop.eup %1230 }
 0x820   :  { %v1081_v55 = vmul.f32 0.6931472, %v1231_v37 }
 0x822   :  { %v1083_v39 = vsub.f32 %v1069_v27, %v1081_v55 }
 0x824   :  { %1085 = vst [vmem:[#allocation11 + $0x8] sm:$0xff] %v1083_v39 }
 0x825   :  { %1098 = dma.vmem_to_hbm [thread:$0]  %s1091_s1, 256, %s1093_s25, [#allocation4], %s1388_s30, %s1388_s30, %s1389_s20  }
 0x826   :  { %1382 = dma.done.wait [#allocation4], 256  }
 0x827   :  { %1383 = vsyncadd [#allocation4], 4294967040 }
 0x828   :  { %1103 = vsyncpa [#allocation3], 1 }
 0x829   :  { %1104 = vsyncpa [#allocation6], 1 }
 0x82a   :  { %1105 = vsyncpa [#allocation9], 1 }
 0x82b   :  { %1106 = vsyncpa [#allocation4], 1 }

</bundles_post_ra>
